<compile_context>
chip_gen: v7x
topology: tpu7x:2x2x1
jax: 0.10.0
libtpu: 0.0.40
codegen_flags: <defaults>
</compile_context>

<pallas_src>
import functools

import jax
import jax.numpy as jnp
from jax import lax
from jax.experimental import pallas as pl
from jax.experimental.pallas import tpu as pltpu


TB = 8        # unrolled time steps per inner block (scheduler window)
LANE = 128    # TPU lane width; D_cell is padded to a multiple of this
SUB = 16      # bf16 sublane packing; time-tile sizes are multiples of this


def _round_up(x, m):
    return ((x + m - 1) // m) * m


def lstm_kernel(x_ref, wx_ref, wh_ref, b_ref, h_out_ref, xw_sc, h_sc, c_sc):
    """One time tile of the LSTM recurrence.

    x_ref    : (T_TILE, D_in)      bf16  time-major input tile (streamed)
    wx_ref   : (D_in, 4*Dc_p)      bf16  fused input weights  [f|i|g|o]
    wh_ref   : (Dc_p, 4*Dc_p)      bf16  fused recurrent weights
    b_ref    : (1, 4*Dc_p)         f32   fused bias
    h_out_ref: (T_TILE, Dc_p)      f32   hidden-state output tile (streamed)
    xw_sc    : (T_TILE, 4*Dc_p)    f32   per-tile hoisted projection scratch
    h_sc,c_sc: (1, Dc_p)           f32   persistent state across grid steps
    """
    t_tile = x_ref.shape[0]
    dcp = h_sc.shape[1]

    @pl.when(pl.program_id(0) == 0)
    def _init():
        h_sc[...] = jnp.zeros_like(h_sc)
        c_sc[...] = jnp.zeros_like(c_sc)

    # Hoisted input projection for this tile: one bf16 MXU matmul, f32 accum.
    xw_sc[...] = (
        jnp.dot(x_ref[...], wx_ref[...], preferred_element_type=jnp.float32)
        + b_ref[...]
    )

    def sigmoid(z):
        # Exactly sigmoid(z): one EUP tanh push + cheap VPU mul/add.
        return 0.5 * jnp.tanh(0.5 * z) + 0.5

    def block_body(blk, carry):
        h, c = carry  # (1, Dc_p) f32, loop-carried in vregs
        t0 = pl.multiple_of(blk * TB, TB)
        for j in range(TB):  # fully unrolled -> scheduler overlaps steps
            # Single fused recurrent matmul per step (bf16 operands, f32 acc).
            pre = xw_sc[pl.ds(t0 + j, 1), :] + jnp.dot(
                h.astype(jnp.bfloat16), wh_ref[...],
                preferred_element_type=jnp.float32,
            )  # (1, 4*Dc_p)
            # Lane-aligned gate slices (Dc_p is a multiple of 128).
            f = sigmoid(pre[:, 0 * dcp:1 * dcp])
            i = sigmoid(pre[:, 1 * dcp:2 * dcp])
            g = jnp.tanh(pre[:, 2 * dcp:3 * dcp])
            o = sigmoid(pre[:, 3 * dcp:4 * dcp])
            c = f * c + i * g
            h = o * jnp.tanh(c)
            # Lane-dense single-row store into the output tile.
            h_out_ref[pl.ds(t0 + j, 1), :] = h
        return h, c

    h_fin, c_fin = lax.fori_loop(
        0, t_tile // TB, block_body, (h_sc[...], c_sc[...]))
    h_sc[...] = h_fin
    c_sc[...] = c_fin


@functools.partial(jax.jit, static_argnames=("t_tile",))
def lstm_forward(x, wx, wh, b, *, t_tile=256):
    """x: (D_in, T) -> h: (D_cell, T), matching the PyTorch module output.

    wx: (D_in, 4*D_cell), wh: (D_cell, 4*D_cell), b: (1, 4*D_cell),
    gate lane order: [forget, input_sigmoid, input_tanh, output]
    (b is the per-gate Linear biases concatenated; see fuse_gate_params).
    """
    D_in, T = x.shape
    Dc = wh.shape[0]
    assert wx.shape == (D_in, 4 * Dc)
    assert b.shape == (1, 4 * Dc)
    assert t_tile % SUB == 0 and t_tile % TB == 0

    Dc_p = _round_up(Dc, LANE)                 # lane-aligned hidden width
    T_TILE = min(t_tile, _round_up(T, SUB))    # time tile (multiple of 16)
    T_pad = _round_up(T, T_TILE)

    def pad_gates(w, rows_to=None):
        # (R, 4*Dc) -> (rows_to, 4*Dc_p); zero-pad each gate block to Dc_p.
        R = w.shape[0]
        w4 = w.reshape(R, 4, Dc)
        w4 = jnp.pad(w4, ((0, 0), (0, 0), (0, Dc_p - Dc)))
        w = w4.reshape(R, 4 * Dc_p)
        if rows_to is not None and rows_to != R:
            w = jnp.pad(w, ((0, rows_to - R), (0, 0)))
        return w

    wx_p = pad_gates(wx).astype(jnp.bfloat16)                 # (D_in, 4*Dc_p)
    wh_p = pad_gates(wh, rows_to=Dc_p).astype(jnp.bfloat16)   # (Dc_p, 4*Dc_p)
    b_p = pad_gates(b).astype(jnp.float32)                    # (1, 4*Dc_p)

    # Time-major input for sublane-aligned streaming tiles.  Padded timesteps
    # (zeros) come after the real sequence and are sliced away below.
    x_tm = x.T.astype(jnp.bfloat16)
    if T_pad != T:
        x_tm = jnp.pad(x_tm, ((0, T_pad - T), (0, 0)))

    grid = (T_pad // T_TILE,)

    # VMEM budget: 2x double-buffered x/h tiles + resident weights + scratch.
    vmem_bytes = (
        2 * T_TILE * D_in * 2          # x tile, double-buffered, bf16
        + 2 * T_TILE * Dc_p * 4        # h tile, double-buffered, f32
        + D_in * 4 * Dc_p * 2          # wx, bf16
        + Dc_p * 4 * Dc_p * 2          # wh, bf16
        + 4 * Dc_p * 4                 # bias
        + T_TILE * 4 * Dc_p * 4        # xw scratch, f32
        + 2 * Dc_p * 4                 # h/c state
    )
    # Stay within v7x's 64 MiB physical VMEM while exceeding the 16/32 MiB
    # default scoped limit when useful on v5e/v6e.
    vmem_limit = min(max((vmem_bytes * 3) // 2, 16 << 20), 48 << 20)

    h_tm = pl.pallas_call(
        lstm_kernel,
        out_shape=jax.ShapeDtypeStruct((T_pad, Dc_p), jnp.float32),
        grid_spec=pltpu.PrefetchScalarGridSpec(
            num_scalar_prefetch=0,
            grid=grid,
            in_specs=[
                pl.BlockSpec((T_TILE, D_in), lambda i: (i, 0)),       # x tile
                pl.BlockSpec((D_in, 4 * Dc_p), lambda i: (0, 0)),     # Wx
                pl.BlockSpec((Dc_p, 4 * Dc_p), lambda i: (0, 0)),     # Wh
                pl.BlockSpec((1, 4 * Dc_p), lambda i: (0, 0)),        # bias
            ],
            out_specs=pl.BlockSpec((T_TILE, Dc_p), lambda i: (i, 0)),
            scratch_shapes=[
                pltpu.VMEM((T_TILE, 4 * Dc_p), jnp.float32),  # hoisted x@Wx+b
                pltpu.VMEM((1, Dc_p), jnp.float32),           # persistent h
                pltpu.VMEM((1, Dc_p), jnp.float32),           # persistent c
            ],
        ),
        compiler_params=pltpu.CompilerParams(
            dimension_semantics=("arbitrary",),   # sequential carry over time
            vmem_limit_bytes=vmem_limit,
        ),
    )(x_tm, wx_p, wh_p, b_p)

    # Back to the PyTorch (D_cell, T) layout; drop time/lane padding.
    return h_tm[:T, :Dc].T


def fuse_gate_params(gate_params, D_in):
    """Fuse four Linear(D_in + D_cell, D_cell) layers into (wx, wh, b).

    gate_params: [(weight, bias)] in order [forget, input_sigmoid,
    input_tanh, output]; weight: (D_cell, D_in + D_cell) (torch Linear layout).
    """
    wx = jnp.concatenate([w[:, :D_in].T for w, _ in gate_params], axis=1)
    wh = jnp.concatenate([w[:, D_in:].T for w, _ in gate_params], axis=1)
    b = jnp.concatenate([bb for _, bb in gate_params])[None, :]
    return wx, wh, b


def lstm_reference(x, gate_params):
    """Pure-JAX f32 mirror of the PyTorch module's python loop."""
    (w_f, b_f), (w_i, b_i), (w_g, b_g), (w_o, b_o) = gate_params
    D_in, T = x.shape
    Dc = w_f.shape[0]
    c = jnp.zeros((Dc,), jnp.float32)
    h = jnp.zeros((Dc,), jnp.float32)
    hs = []
    for t in range(T):
        xh = jnp.concatenate([x[:, t], h], axis=0)
        f = jax.nn.sigmoid(w_f @ xh + b_f)
        g = jnp.tanh(w_g @ xh + b_g)
        i = jax.nn.sigmoid(w_i @ xh + b_i)
        o = jax.nn.sigmoid(w_o @ xh + b_o)
        c = f * c + i * g
        h = o * jnp.tanh(c)
        hs.append(h)
    return jnp.stack(hs, axis=1)  # (D_cell, T)


if __name__ == "__main__":
    D_in, D_cell, T = 16, 32, 40

    key = jax.random.PRNGKey(0)
    keys = jax.random.split(key, 9)
    scale = 1.0 / jnp.sqrt(jnp.float32(D_in + D_cell))

    # Four Linear(D_in + D_cell, D_cell) layers, order [f, i_sigmoid, i_tanh, o].
    gate_params = []
    for k in range(4):
        w = jax.random.uniform(keys[2 * k], (D_cell, D_in + D_cell),
                               jnp.float32, -scale, scale)
        bb = jax.random.uniform(keys[2 * k + 1], (D_cell,),
                                jnp.float32, -scale, scale)
        gate_params.append((w, bb))

    x = jax.random.normal(keys[8], (D_in, T), jnp.float32)

    wx, wh, b = fuse_gate_params(gate_params, D_in)

    # Small t_tile so the test exercises multiple grid steps and the persistent
    # h/c carry (T=40 -> T_pad=48 -> grid=(3,)), plus Dc padding 32 -> 128.
    h = lstm_forward(x, wx, wh, b, t_tile=16)
    h = jax.block_until_ready(h)

    h_ref = lstm_reference(x, gate_params)
    assert h.shape == (D_cell, T)
    # bf16 matmul operands (f32 accumulation / f32 state) vs. pure-f32 reference.
    err = float(jnp.max(jnp.abs(h - h_ref)))
    assert err < 3e-2, f"Pallas LSTM mismatch vs reference (max abs err {err})"

    print("KERNEL_OK")
</pallas_src>

<mosaic_0001>
module attributes {stable_mosaic.version = 11 : i64} {
  func.func @lstm_kernel(%arg0: i32, %arg1: memref<16x16xbf16, #tpu.memory_space<vmem>>, %arg2: memref<16x512xbf16, #tpu.memory_space<vmem>>, %arg3: memref<128x512xbf16, #tpu.memory_space<vmem>>, %arg4: memref<1x512xf32, #tpu.memory_space<vmem>>, %arg5: memref<16x128xf32, #tpu.memory_space<vmem>>, %arg6: memref<16x512xf32, #tpu.memory_space<vmem>>, %arg7: memref<1x128xf32, #tpu.memory_space<vmem>>, %arg8: memref<1x128xf32, #tpu.memory_space<vmem>>) attributes {dimension_semantics = [#tpu.dimension_semantics<arbitrary>], iteration_bounds = array<i64: 3>, scalar_prefetch = 0 : i64, scratch_operands = 3 : i64, tpu.core_type = #tpu.core_type<tc>, window_params = [{transform_indices = @transform_0, window_bounds = array<i64: 16, 16>}, {pipeline_mode = #tpu.pipeline_mode<synchronous>, transform_indices = @transform_1, window_bounds = array<i64: 16, 512>}, {pipeline_mode = #tpu.pipeline_mode<synchronous>, transform_indices = @transform_2, window_bounds = array<i64: 128, 512>}, {pipeline_mode = #tpu.pipeline_mode<synchronous>, transform_indices = @transform_3, window_bounds = array<i64: 1, 512>}, {transform_indices = @transform_4, window_bounds = array<i64: 16, 128>}]} {
    %c0_i32 = arith.constant 0 : i32
    %0 = arith.cmpi eq, %arg0, %c0_i32 : i32
    %1 = arith.extui %0 : i1 to i32
    %c0_i32_0 = arith.constant 0 : i32
    %2 = arith.cmpi ne, %1, %c0_i32_0 : i32
    scf.if %2 {
      %cst_18 = arith.constant 0.000000e+00 : f32
      %16 = vector.broadcast %cst_18 : f32 to vector<1x128xf32>
      %c0_19 = arith.constant 0 : index
      %c0_20 = arith.constant 0 : index
      %17 = vector.load %arg7[%c0_19, %c0_20] : memref<1x128xf32, #tpu.memory_space<vmem>>, vector<1x128xf32>
      tpu.vector_store %arg7[%c0_19, %c0_20], %16 {strides = array<i32>} : memref<1x128xf32, #tpu.memory_space<vmem>>, vector<1x128xf32>,
      %cst_21 = arith.constant 0.000000e+00 : f32
      %18 = vector.broadcast %cst_21 : f32 to vector<1x128xf32>
      %c0_22 = arith.constant 0 : index
      %c0_23 = arith.constant 0 : index
      %19 = vector.load %arg8[%c0_22, %c0_23] : memref<1x128xf32, #tpu.memory_space<vmem>>, vector<1x128xf32>
      tpu.vector_store %arg8[%c0_22, %c0_23], %18 {strides = array<i32>} : memref<1x128xf32, #tpu.memory_space<vmem>>, vector<1x128xf32>,
    } else {
    }
    %c0 = arith.constant 0 : index
    %c0_1 = arith.constant 0 : index
    %3 = vector.load %arg1[%c0, %c0_1] : memref<16x16xbf16, #tpu.memory_space<vmem>>, vector<16x16xbf16>
    %c0_2 = arith.constant 0 : index
    %c0_3 = arith.constant 0 : index
    %4 = vector.load %arg2[%c0_2, %c0_3] : memref<16x512xbf16, #tpu.memory_space<vmem>>, vector<16x512xbf16>
    %cst = arith.constant dense<0.000000e+00> : vector<16x512xf32>
    %5 = tpu.matmul %3, %4, %cst {dimension_numbers = #tpu.dot_dimension_numbers<[1], [0], [0], [1], [0, 0, 1, 1], [], []>} : vector<16x16xbf16>, vector<16x512xbf16>, vector<16x512xf32> -> vector<16x512xf32>
    %c0_4 = arith.constant 0 : index
    %c0_5 = arith.constant 0 : index
    %6 = vector.load %arg4[%c0_4, %c0_5] : memref<1x512xf32, #tpu.memory_space<vmem>>, vector<1x512xf32>
    %7 = vector.broadcast %6 : vector<1x512xf32> to vector<16x512xf32>
    %8 = arith.addf %5, %7 : vector<16x512xf32>
    %c0_6 = arith.constant 0 : index
    %c0_7 = arith.constant 0 : index
    %9 = vector.load %arg6[%c0_6, %c0_7] : memref<16x512xf32, #tpu.memory_space<vmem>>, vector<16x512xf32>
    tpu.vector_store %arg6[%c0_6, %c0_7], %8 {strides = array<i32>} : memref<16x512xf32, #tpu.memory_space<vmem>>, vector<16x512xf32>,
    %c0_8 = arith.constant 0 : index
    %c0_9 = arith.constant 0 : index
    %10 = vector.load %arg7[%c0_8, %c0_9] : memref<1x128xf32, #tpu.memory_space<vmem>>, vector<1x128xf32>
    %c0_10 = arith.constant 0 : index
    %c0_11 = arith.constant 0 : index
    %11 = vector.load %arg8[%c0_10, %c0_11] : memref<1x128xf32, #tpu.memory_space<vmem>>, vector<1x128xf32>
    %c0_i32_12 = arith.constant 0 : i32
    %c2_i32 = arith.constant 2 : i32
    %12 = arith.addi %c0_i32_12, %c2_i32 : i32
    %c1_i32 = arith.constant 1 : i32
    %13:2 = scf.for %arg9 = %c0_i32_12 to %12 step %c1_i32 iter_args(%arg10 = %10, %arg11 = %11) -> (vector<1x128xf32>, vector<1x128xf32>)  : i32 {
      %c8_i32 = arith.constant 8 : i32
      %16 = arith.muli %arg9, %c8_i32 : i32
      %17 = tpu.assume_multiple %16, 8 : i32
      %c0_i32_18 = arith.constant 0 : i32
      %18 = arith.addi %17, %c0_i32_18 : i32
      %19 = arith.index_cast %18 : i32 to index
      %c0_19 = arith.constant 0 : index
      %20 = vector.load %arg6[%19, %c0_19] : memref<16x512xf32, #tpu.memory_space<vmem>>, vector<1x512xf32>
      %21 = arith.truncf %arg10 : vector<1x128xf32> to vector<1x128xbf16>
      %c0_20 = arith.constant 0 : index
      %c0_21 = arith.constant 0 : index
      %22 = vector.load %arg3[%c0_20, %c0_21] : memref<128x512xbf16, #tpu.memory_space<vmem>>, vector<128x512xbf16>
      %cst_22 = arith.constant dense<0.000000e+00> : vector<1x512xf32>
      %23 = tpu.matmul %21, %22, %cst_22 {dimension_numbers = #tpu.dot_dimension_numbers<[1], [0], [0], [1], [0, 0, 1, 1], [], []>} : vector<1x128xbf16>, vector<128x512xbf16>, vector<1x512xf32> -> vector<1x512xf32>
      %24 = arith.addf %20, %23 : vector<1x512xf32>
      %25 = vector.extract_strided_slice %24 {offsets = [0, 0], sizes = [1, 128], strides = [1, 1]} : vector<1x512xf32> to vector<1x128xf32>
      %cst_23 = arith.constant 5.000000e-01 : f32
      %26 = vector.broadcast %cst_23 : f32 to vector<1x128xf32>
      %27 = arith.mulf %26, %25 : vector<1x128xf32>
      %28 = math.tanh %27 : vector<1x128xf32>
      %cst_24 = arith.constant 5.000000e-01 : f32
      %29 = vector.broadcast %cst_24 : f32 to vector<1x128xf32>
      %30 = arith.mulf %29, %28 : vector<1x128xf32>
      %cst_25 = arith.constant 5.000000e-01 : f32
      %31 = vector.broadcast %cst_25 : f32 to vector<1x128xf32>
      %32 = arith.addf %30, %31 : vector<1x128xf32>
      %33 = vector.extract_strided_slice %24 {offsets = [0, 128], sizes = [1, 128], strides = [1, 1]} : vector<1x512xf32> to vector<1x128xf32>
      %cst_26 = arith.constant 5.000000e-01 : f32
      %34 = vector.broadcast %cst_26 : f32 to vector<1x128xf32>
      %35 = arith.mulf %34, %33 : vector<1x128xf32>
      %36 = math.tanh %35 : vector<1x128xf32>
      %cst_27 = arith.constant 5.000000e-01 : f32
      %37 = vector.broadcast %cst_27 : f32 to vector<1x128xf32>
      %38 = arith.mulf %37, %36 : vector<1x128xf32>
      %cst_28 = arith.constant 5.000000e-01 : f32
      %39 = vector.broadcast %cst_28 : f32 to vector<1x128xf32>
      %40 = arith.addf %38, %39 : vector<1x128xf32>
      %41 = vector.extract_strided_slice %24 {offsets = [0, 256], sizes = [1, 128], strides = [1, 1]} : vector<1x512xf32> to vector<1x128xf32>
      %42 = math.tanh %41 : vector<1x128xf32>
      %43 = vector.extract_strided_slice %24 {offsets = [0, 384], sizes = [1, 128], strides = [1, 1]} : vector<1x512xf32> to vector<1x128xf32>
      %cst_29 = arith.constant 5.000000e-01 : f32
      %44 = vector.broadcast %cst_29 : f32 to vector<1x128xf32>
      %45 = arith.mulf %44, %43 : vector<1x128xf32>
      %46 = math.tanh %45 : vector<1x128xf32>
      %cst_30 = arith.constant 5.000000e-01 : f32
      %47 = vector.broadcast %cst_30 : f32 to vector<1x128xf32>
      %48 = arith.mulf %47, %46 : vector<1x128xf32>
      %cst_31 = arith.constant 5.000000e-01 : f32
      %49 = vector.broadcast %cst_31 : f32 to vector<1x128xf32>
      %50 = arith.addf %48, %49 : vector<1x128xf32>
      %51 = arith.mulf %32, %arg11 : vector<1x128xf32>
      %52 = arith.mulf %40, %42 : vector<1x128xf32>
      %53 = arith.addf %51, %52 : vector<1x128xf32>
      %54 = math.tanh %53 : vector<1x128xf32>
      %55 = arith.mulf %50, %54 : vector<1x128xf32>
      %c0_i32_32 = arith.constant 0 : i32
      %56 = arith.addi %17, %c0_i32_32 : i32
      %57 = arith.index_cast %56 : i32 to index
      %c0_33 = arith.constant 0 : index
      %58 = vector.load %arg5[%57, %c0_33] : memref<16x128xf32, #tpu.memory_space<vmem>>, vector<1x128xf32>
      tpu.vector_store %arg5[%57, %c0_33], %55 {strides = array<i32>} : memref<16x128xf32, #tpu.memory_space<vmem>>, vector<1x128xf32>,
      %c1_i32_34 = arith.constant 1 : i32
      %59 = arith.addi %17, %c1_i32_34 : i32
      %60 = arith.index_cast %59 : i32 to index
      %c0_35 = arith.constant 0 : index
      %61 = vector.load %arg6[%60, %c0_35] : memref<16x512xf32, #tpu.memory_space<vmem>>, vector<1x512xf32>
      %62 = arith.truncf %55 : vector<1x128xf32> to vector<1x128xbf16>
      %c0_36 = arith.constant 0 : index
      %c0_37 = arith.constant 0 : index
      %63 = vector.load %arg3[%c0_36, %c0_37] : memref<128x512xbf16, #tpu.memory_space<vmem>>, vector<128x512xbf16>
      %cst_38 = arith.constant dense<0.000000e+00> : vector<1x512xf32>
      %64 = tpu.matmul %62, %63, %cst_38 {dimension_numbers = #tpu.dot_dimension_numbers<[1], [0], [0], [1], [0, 0, 1, 1], [], []>} : vector<1x128xbf16>, vector<128x512xbf16>, vector<1x512xf32> -> vector<1x512xf32>
      %65 = arith.addf %61, %64 : vector<1x512xf32>
      %66 = vector.extract_strided_slice %65 {offsets = [0, 0], sizes = [1, 128], strides = [1, 1]} : vector<1x512xf32> to vector<1x128xf32>
      %cst_39 = arith.constant 5.000000e-01 : f32
      %67 = vector.broadcast %cst_39 : f32 to vector<1x128xf32>
      %68 = arith.mulf %67, %66 : vector<1x128xf32>
      %69 = math.tanh %68 : vector<1x128xf32>
      %cst_40 = arith.constant 5.000000e-01 : f32
      %70 = vector.broadcast %cst_40 : f32 to vector<1x128xf32>
      %71 = arith.mulf %70, %69 : vector<1x128xf32>
      %cst_41 = arith.constant 5.000000e-01 : f32
      %72 = vector.broadcast %cst_41 : f32 to vector<1x128xf32>
      %73 = arith.addf %71, %72 : vector<1x128xf32>
      %74 = vector.extract_strided_slice %65 {offsets = [0, 128], sizes = [1, 128], strides = [1, 1]} : vector<1x512xf32> to vector<1x128xf32>
      %cst_42 = arith.constant 5.000000e-01 : f32
      %75 = vector.broadcast %cst_42 : f32 to vector<1x128xf32>
      %76 = arith.mulf %75, %74 : vector<1x128xf32>
      %77 = math.tanh %76 : vector<1x128xf32>
      %cst_43 = arith.constant 5.000000e-01 : f32
      %78 = vector.broadcast %cst_43 : f32 to vector<1x128xf32>
      %79 = arith.mulf %78, %77 : vector<1x128xf32>
      %cst_44 = arith.constant 5.000000e-01 : f32
      %80 = vector.broadcast %cst_44 : f32 to vector<1x128xf32>
      %81 = arith.addf %79, %80 : vector<1x128xf32>
      %82 = vector.extract_strided_slice %65 {offsets = [0, 256], sizes = [1, 128], strides = [1, 1]} : vector<1x512xf32> to vector<1x128xf32>
      %83 = math.tanh %82 : vector<1x128xf32>
      %84 = vector.extract_strided_slice %65 {offsets = [0, 384], sizes = [1, 128], strides = [1, 1]} : vector<1x512xf32> to vector<1x128xf32>
      %cst_45 = arith.constant 5.000000e-01 : f32
      %85 = vector.broadcast %cst_45 : f32 to vector<1x128xf32>
      %86 = arith.mulf %85, %84 : vector<1x128xf32>
      %87 = math.tanh %86 : vector<1x128xf32>
      %cst_46 = arith.constant 5.000000e-01 : f32
      %88 = vector.broadcast %cst_46 : f32 to vector<1x128xf32>
      %89 = arith.mulf %88, %87 : vector<1x128xf32>
      %cst_47 = arith.constant 5.000000e-01 : f32
      %90 = vector.broadcast %cst_47 : f32 to vector<1x128xf32>
      %91 = arith.addf %89, %90 : vector<1x128xf32>
      %92 = arith.mulf %73, %53 : vector<1x128xf32>
      %93 = arith.mulf %81, %83 : vector<1x128xf32>
      %94 = arith.addf %92, %93 : vector<1x128xf32>
      %95 = math.tanh %94 : vector<1x128xf32>
      %96 = arith.mulf %91, %95 : vector<1x128xf32>
      %c1_i32_48 = arith.constant 1 : i32
      %97 = arith.addi %17, %c1_i32_48 : i32
      %98 = arith.index_cast %97 : i32 to index
      %c0_49 = arith.constant 0 : index
      %99 = vector.load %arg5[%98, %c0_49] : memref<16x128xf32, #tpu.memory_space<vmem>>, vector<1x128xf32>
      tpu.vector_store %arg5[%98, %c0_49], %96 {strides = array<i32>} : memref<16x128xf32, #tpu.memory_space<vmem>>, vector<1x128xf32>,
      %c2_i32_50 = arith.constant 2 : i32
      %100 = arith.addi %17, %c2_i32_50 : i32
      %101 = arith.index_cast %100 : i32 to index
      %c0_51 = arith.constant 0 : index
      %102 = vector.load %arg6[%101, %c0_51] : memref<16x512xf32, #tpu.memory_space<vmem>>, vector<1x512xf32>
      %103 = arith.truncf %96 : vector<1x128xf32> to vector<1x128xbf16>
      %c0_52 = arith.constant 0 : index
      %c0_53 = arith.constant 0 : index
      %104 = vector.load %arg3[%c0_52, %c0_53] : memref<128x512xbf16, #tpu.memory_space<vmem>>, vector<128x512xbf16>
      %cst_54 = arith.constant dense<0.000000e+00> : vector<1x512xf32>
      %105 = tpu.matmul %103, %104, %cst_54 {dimension_numbers = #tpu.dot_dimension_numbers<[1], [0], [0], [1], [0, 0, 1, 1], [], []>} : vector<1x128xbf16>, vector<128x512xbf16>, vector<1x512xf32> -> vector<1x512xf32>
      %106 = arith.addf %102, %105 : vector<1x512xf32>
      %107 = vector.extract_strided_slice %106 {offsets = [0, 0], sizes = [1, 128], strides = [1, 1]} : vector<1x512xf32> to vector<1x128xf32>
      %cst_55 = arith.constant 5.000000e-01 : f32
      %108 = vector.broadcast %cst_55 : f32 to vector<1x128xf32>
      %109 = arith.mulf %108, %107 : vector<1x128xf32>
      %110 = math.tanh %109 : vector<1x128xf32>
      %cst_56 = arith.constant 5.000000e-01 : f32
      %111 = vector.broadcast %cst_56 : f32 to vector<1x128xf32>
      %112 = arith.mulf %111, %110 : vector<1x128xf32>
      %cst_57 = arith.constant 5.000000e-01 : f32
      %113 = vector.broadcast %cst_57 : f32 to vector<1x128xf32>
      %114 = arith.addf %112, %113 : vector<1x128xf32>
      %115 = vector.extract_strided_slice %106 {offsets = [0, 128], sizes = [1, 128], strides = [1, 1]} : vector<1x512xf32> to vector<1x128xf32>
      %cst_58 = arith.constant 5.000000e-01 : f32
      %116 = vector.broadcast %cst_58 : f32 to vector<1x128xf32>
      %117 = arith.mulf %116, %115 : vector<1x128xf32>
      %118 = math.tanh %117 : vector<1x128xf32>
      %cst_59 = arith.constant 5.000000e-01 : f32
      %119 = vector.broadcast %cst_59 : f32 to vector<1x128xf32>
      %120 = arith.mulf %119, %118 : vector<1x128xf32>
      %cst_60 = arith.constant 5.000000e-01 : f32
      %121 = vector.broadcast %cst_60 : f32 to vector<1x128xf32>
      %122 = arith.addf %120, %121 : vector<1x128xf32>
      %123 = vector.extract_strided_slice %106 {offsets = [0, 256], sizes = [1, 128], strides = [1, 1]} : vector<1x512xf32> to vector<1x128xf32>
      %124 = math.tanh %123 : vector<1x128xf32>
      %125 = vector.extract_strided_slice %106 {offsets = [0, 384], sizes = [1, 128], strides = [1, 1]} : vector<1x512xf32> to vector<1x128xf32>
      %cst_61 = arith.constant 5.000000e-01 : f32
      %126 = vector.broadcast %cst_61 : f32 to vector<1x128xf32>
      %127 = arith.mulf %126, %125 : vector<1x128xf32>
      %128 = math.tanh %127 : vector<1x128xf32>
      %cst_62 = arith.constant 5.000000e-01 : f32
      %129 = vector.broadcast %cst_62 : f32 to vector<1x128xf32>
      %130 = arith.mulf %129, %128 : vector<1x128xf32>
      %cst_63 = arith.constant 5.000000e-01 : f32
      %131 = vector.broadcast %cst_63 : f32 to vector<1x128xf32>
      %132 = arith.addf %130, %131 : vector<1x128xf32>
      %133 = arith.mulf %114, %94 : vector<1x128xf32>
      %134 = arith.mulf %122, %124 : vector<1x128xf32>
      %135 = arith.addf %133, %134 : vector<1x128xf32>
      %136 = math.tanh %135 : vector<1x128xf32>
      %137 = arith.mulf %132, %136 : vector<1x128xf32>
      %c2_i32_64 = arith.constant 2 : i32
      %138 = arith.addi %17, %c2_i32_64 : i32
      %139 = arith.index_cast %138 : i32 to index
      %c0_65 = arith.constant 0 : index
      %140 = vector.load %arg5[%139, %c0_65] : memref<16x128xf32, #tpu.memory_space<vmem>>, vector<1x128xf32>
      tpu.vector_store %arg5[%139, %c0_65], %137 {strides = array<i32>} : memref<16x128xf32, #tpu.memory_space<vmem>>, vector<1x128xf32>,
      %c3_i32 = arith.constant 3 : i32
      %141 = arith.addi %17, %c3_i32 : i32
      %142 = arith.index_cast %141 : i32 to index
      %c0_66 = arith.constant 0 : index
      %143 = vector.load %arg6[%142, %c0_66] : memref<16x512xf32, #tpu.memory_space<vmem>>, vector<1x512xf32>
      %144 = arith.truncf %137 : vector<1x128xf32> to vector<1x128xbf16>
      %c0_67 = arith.constant 0 : index
      %c0_68 = arith.constant 0 : index
      %145 = vector.load %arg3[%c0_67, %c0_68] : memref<128x512xbf16, #tpu.memory_space<vmem>>, vector<128x512xbf16>
      %cst_69 = arith.constant dense<0.000000e+00> : vector<1x512xf32>
      %146 = tpu.matmul %144, %145, %cst_69 {dimension_numbers = #tpu.dot_dimension_numbers<[1], [0], [0], [1], [0, 0, 1, 1], [], []>} : vector<1x128xbf16>, vector<128x512xbf16>, vector<1x512xf32> -> vector<1x512xf32>
      %147 = arith.addf %143, %146 : vector<1x512xf32>
      %148 = vector.extract_strided_slice %147 {offsets = [0, 0], sizes = [1, 128], strides = [1, 1]} : vector<1x512xf32> to vector<1x128xf32>
      %cst_70 = arith.constant 5.000000e-01 : f32
      %149 = vector.broadcast %cst_70 : f32 to vector<1x128xf32>
      %150 = arith.mulf %149, %148 : vector<1x128xf32>
      %151 = math.tanh %150 : vector<1x128xf32>
      %cst_71 = arith.constant 5.000000e-01 : f32
      %152 = vector.broadcast %cst_71 : f32 to vector<1x128xf32>
      %153 = arith.mulf %152, %151 : vector<1x128xf32>
      %cst_72 = arith.constant 5.000000e-01 : f32
      %154 = vector.broadcast %cst_72 : f32 to vector<1x128xf32>
      %155 = arith.addf %153, %154 : vector<1x128xf32>
      %156 = vector.extract_strided_slice %147 {offsets = [0, 128], sizes = [1, 128], strides = [1, 1]} : vector<1x512xf32> to vector<1x128xf32>
      %cst_73 = arith.constant 5.000000e-01 : f32
      %157 = vector.broadcast %cst_73 : f32 to vector<1x128xf32>
      %158 = arith.mulf %157, %156 : vector<1x128xf32>
      %159 = math.tanh %158 : vector<1x128xf32>
      %cst_74 = arith.constant 5.000000e-01 : f32
      %160 = vector.broadcast %cst_74 : f32 to vector<1x128xf32>
      %161 = arith.mulf %160, %159 : vector<1x128xf32>
      %cst_75 = arith.constant 5.000000e-01 : f32
      %162 = vector.broadcast %cst_75 : f32 to vector<1x128xf32>
      %163 = arith.addf %161, %162 : vector<1x128xf32>
      %164 = vector.extract_strided_slice %147 {offsets = [0, 256], sizes = [1, 128], strides = [1, 1]} : vector<1x512xf32> to vector<1x128xf32>
      %165 = math.tanh %164 : vector<1x128xf32>
      %166 = vector.extract_strided_slice %147 {offsets = [0, 384], sizes = [1, 128], strides = [1, 1]} : vector<1x512xf32> to vector<1x128xf32>
      %cst_76 = arith.constant 5.000000e-01 : f32
      %167 = vector.broadcast %cst_76 : f32 to vector<1x128xf32>
      %168 = arith.mulf %167, %166 : vector<1x128xf32>
      %169 = math.tanh %168 : vector<1x128xf32>
      %cst_77 = arith.constant 5.000000e-01 : f32
      %170 = vector.broadcast %cst_77 : f32 to vector<1x128xf32>
      %171 = arith.mulf %170, %169 : vector<1x128xf32>
      %cst_78 = arith.constant 5.000000e-01 : f32
      %172 = vector.broadcast %cst_78 : f32 to vector<1x128xf32>
      %173 = arith.addf %171, %172 : vector<1x128xf32>
      %174 = arith.mulf %155, %135 : vector<1x128xf32>
      %175 = arith.mulf %163, %165 : vector<1x128xf32>
      %176 = arith.addf %174, %175 : vector<1x128xf32>
      %177 = math.tanh %176 : vector<1x128xf32>
      %178 = arith.mulf %173, %177 : vector<1x128xf32>
      %c3_i32_79 = arith.constant 3 : i32
      %179 = arith.addi %17, %c3_i32_79 : i32
      %180 = arith.index_cast %179 : i32 to index
      %c0_80 = arith.constant 0 : index
      %181 = vector.load %arg5[%180, %c0_80] : memref<16x128xf32, #tpu.memory_space<vmem>>, vector<1x128xf32>
      tpu.vector_store %arg5[%180, %c0_80], %178 {strides = array<i32>} : memref<16x128xf32, #tpu.memory_space<vmem>>, vector<1x128xf32>,
      %c4_i32 = arith.constant 4 : i32
      %182 = arith.addi %17, %c4_i32 : i32
      %183 = arith.index_cast %182 : i32 to index
      %c0_81 = arith.constant 0 : index
      %184 = vector.load %arg6[%183, %c0_81] : memref<16x512xf32, #tpu.memory_space<vmem>>, vector<1x512xf32>
      %185 = arith.truncf %178 : vector<1x128xf32> to vector<1x128xbf16>
      %c0_82 = arith.constant 0 : index
      %c0_83 = arith.constant 0 : index
      %186 = vector.load %arg3[%c0_82, %c0_83] : memref<128x512xbf16, #tpu.memory_space<vmem>>, vector<128x512xbf16>
      %cst_84 = arith.constant dense<0.000000e+00> : vector<1x512xf32>
      %187 = tpu.matmul %185, %186, %cst_84 {dimension_numbers = #tpu.dot_dimension_numbers<[1], [0], [0], [1], [0, 0, 1, 1], [], []>} : vector<1x128xbf16>, vector<128x512xbf16>, vector<1x512xf32> -> vector<1x512xf32>
      %188 = arith.addf %184, %187 : vector<1x512xf32>
      %189 = vector.extract_strided_slice %188 {offsets = [0, 0], sizes = [1, 128], strides = [1, 1]} : vector<1x512xf32> to vector<1x128xf32>
      %cst_85 = arith.constant 5.000000e-01 : f32
      %190 = vector.broadcast %cst_85 : f32 to vector<1x128xf32>
      %191 = arith.mulf %190, %189 : vector<1x128xf32>
      %192 = math.tanh %191 : vector<1x128xf32>
      %cst_86 = arith.constant 5.000000e-01 : f32
      %193 = vector.broadcast %cst_86 : f32 to vector<1x128xf32>
      %194 = arith.mulf %193, %192 : vector<1x128xf32>
      %cst_87 = arith.constant 5.000000e-01 : f32
      %195 = vector.broadcast %cst_87 : f32 to vector<1x128xf32>
      %196 = arith.addf %194, %195 : vector<1x128xf32>
      %197 = vector.extract_strided_slice %188 {offsets = [0, 128], sizes = [1, 128], strides = [1, 1]} : vector<1x512xf32> to vector<1x128xf32>
      %cst_88 = arith.constant 5.000000e-01 : f32
      %198 = vector.broadcast %cst_88 : f32 to vector<1x128xf32>
      %199 = arith.mulf %198, %197 : vector<1x128xf32>
      %200 = math.tanh %199 : vector<1x128xf32>
      %cst_89 = arith.constant 5.000000e-01 : f32
      %201 = vector.broadcast %cst_89 : f32 to vector<1x128xf32>
      %202 = arith.mulf %201, %200 : vector<1x128xf32>
      %cst_90 = arith.constant 5.000000e-01 : f32
      %203 = vector.broadcast %cst_90 : f32 to vector<1x128xf32>
      %204 = arith.addf %202, %203 : vector<1x128xf32>
      %205 = vector.extract_strided_slice %188 {offsets = [0, 256], sizes = [1, 128], strides = [1, 1]} : vector<1x512xf32> to vector<1x128xf32>
      %206 = math.tanh %205 : vector<1x128xf32>
      %207 = vector.extract_strided_slice %188 {offsets = [0, 384], sizes = [1, 128], strides = [1, 1]} : vector<1x512xf32> to vector<1x128xf32>
      %cst_91 = arith.constant 5.000000e-01 : f32
      %208 = vector.broadcast %cst_91 : f32 to vector<1x128xf32>
      %209 = arith.mulf %208, %207 : vector<1x128xf32>
      %210 = math.tanh %209 : vector<1x128xf32>
      %cst_92 = arith.constant 5.000000e-01 : f32
      %211 = vector.broadcast %cst_92 : f32 to vector<1x128xf32>
      %212 = arith.mulf %211, %210 : vector<1x128xf32>
      %cst_93 = arith.constant 5.000000e-01 : f32
      %213 = vector.broadcast %cst_93 : f32 to vector<1x128xf32>
      %214 = arith.addf %212, %213 : vector<1x128xf32>
      %215 = arith.mulf %196, %176 : vector<1x128xf32>
      %216 = arith.mulf %204, %206 : vector<1x128xf32>
      %217 = arith.addf %215, %216 : vector<1x128xf32>
      %218 = math.tanh %217 : vector<1x128xf32>
      %219 = arith.mulf %214, %218 : vector<1x128xf32>
      %c4_i32_94 = arith.constant 4 : i32
      %220 = arith.addi %17, %c4_i32_94 : i32
      %221 = arith.index_cast %220 : i32 to index
      %c0_95 = arith.constant 0 : index
      %222 = vector.load %arg5[%221, %c0_95] : memref<16x128xf32, #tpu.memory_space<vmem>>, vector<1x128xf32>
      tpu.vector_store %arg5[%221, %c0_95], %219 {strides = array<i32>} : memref<16x128xf32, #tpu.memory_space<vmem>>, vector<1x128xf32>,
      %c5_i32 = arith.constant 5 : i32
      %223 = arith.addi %17, %c5_i32 : i32
      %224 = arith.index_cast %223 : i32 to index
      %c0_96 = arith.constant 0 : index
      %225 = vector.load %arg6[%224, %c0_96] : memref<16x512xf32, #tpu.memory_space<vmem>>, vector<1x512xf32>
      %226 = arith.truncf %219 : vector<1x128xf32> to vector<1x128xbf16>
      %c0_97 = arith.constant 0 : index
      %c0_98 = arith.constant 0 : index
      %227 = vector.load %arg3[%c0_97, %c0_98] : memref<128x512xbf16, #tpu.memory_space<vmem>>, vector<128x512xbf16>
      %cst_99 = arith.constant dense<0.000000e+00> : vector<1x512xf32>
      %228 = tpu.matmul %226, %227, %cst_99 {dimension_numbers = #tpu.dot_dimension_numbers<[1], [0], [0], [1], [0, 0, 1, 1], [], []>} : vector<1x128xbf16>, vector<128x512xbf16>, vector<1x512xf32> -> vector<1x512xf32>
      %229 = arith.addf %225, %228 : vector<1x512xf32>
      %230 = vector.extract_strided_slice %229 {offsets = [0, 0], sizes = [1, 128], strides = [1, 1]} : vector<1x512xf32> to vector<1x128xf32>
      %cst_100 = arith.constant 5.000000e-01 : f32
      %231 = vector.broadcast %cst_100 : f32 to vector<1x128xf32>
      %232 = arith.mulf %231, %230 : vector<1x128xf32>
      %233 = math.tanh %232 : vector<1x128xf32>
      %cst_101 = arith.constant 5.000000e-01 : f32
      %234 = vector.broadcast %cst_101 : f32 to vector<1x128xf32>
      %235 = arith.mulf %234, %233 : vector<1x128xf32>
      %cst_102 = arith.constant 5.000000e-01 : f32
      %236 = vector.broadcast %cst_102 : f32 to vector<1x128xf32>
      %237 = arith.addf %235, %236 : vector<1x128xf32>
      %238 = vector.extract_strided_slice %229 {offsets = [0, 128], sizes = [1, 128], strides = [1, 1]} : vector<1x512xf32> to vector<1x128xf32>
      %cst_103 = arith.constant 5.000000e-01 : f32
      %239 = vector.broadcast %cst_103 : f32 to vector<1x128xf32>
      %240 = arith.mulf %239, %238 : vector<1x128xf32>
      %241 = math.tanh %240 : vector<1x128xf32>
      %cst_104 = arith.constant 5.000000e-01 : f32
      %242 = vector.broadcast %cst_104 : f32 to vector<1x128xf32>
      %243 = arith.mulf %242, %241 : vector<1x128xf32>
      %cst_105 = arith.constant 5.000000e-01 : f32
      %244 = vector.broadcast %cst_105 : f32 to vector<1x128xf32>
      %245 = arith.addf %243, %244 : vector<1x128xf32>
      %246 = vector.extract_strided_slice %229 {offsets = [0, 256], sizes = [1, 128], strides = [1, 1]} : vector<1x512xf32> to vector<1x128xf32>
      %247 = math.tanh %246 : vector<1x128xf32>
      %248 = vector.extract_strided_slice %229 {offsets = [0, 384], sizes = [1, 128], strides = [1, 1]} : vector<1x512xf32> to vector<1x128xf32>
      %cst_106 = arith.constant 5.000000e-01 : f32
      %249 = vector.broadcast %cst_106 : f32 to vector<1x128xf32>
      %250 = arith.mulf %249, %248 : vector<1x128xf32>
      %251 = math.tanh %250 : vector<1x128xf32>
      %cst_107 = arith.constant 5.000000e-01 : f32
      %252 = vector.broadcast %cst_107 : f32 to vector<1x128xf32>
      %253 = arith.mulf %252, %251 : vector<1x128xf32>
      %cst_108 = arith.constant 5.000000e-01 : f32
      %254 = vector.broadcast %cst_108 : f32 to vector<1x128xf32>
      %255 = arith.addf %253, %254 : vector<1x128xf32>
      %256 = arith.mulf %237, %217 : vector<1x128xf32>
      %257 = arith.mulf %245, %247 : vector<1x128xf32>
      %258 = arith.addf %256, %257 : vector<1x128xf32>
      %259 = math.tanh %258 : vector<1x128xf32>
      %260 = arith.mulf %255, %259 : vector<1x128xf32>
      %c5_i32_109 = arith.constant 5 : i32
      %261 = arith.addi %17, %c5_i32_109 : i32
      %262 = arith.index_cast %261 : i32 to index
      %c0_110 = arith.constant 0 : index
      %263 = vector.load %arg5[%262, %c0_110] : memref<16x128xf32, #tpu.memory_space<vmem>>, vector<1x128xf32>
      tpu.vector_store %arg5[%262, %c0_110], %260 {strides = array<i32>} : memref<16x128xf32, #tpu.memory_space<vmem>>, vector<1x128xf32>,
      %c6_i32 = arith.constant 6 : i32
      %264 = arith.addi %17, %c6_i32 : i32
      %265 = arith.index_cast %264 : i32 to index
      %c0_111 = arith.constant 0 : index
      %266 = vector.load %arg6[%265, %c0_111] : memref<16x512xf32, #tpu.memory_space<vmem>>, vector<1x512xf32>
      %267 = arith.truncf %260 : vector<1x128xf32> to vector<1x128xbf16>
      %c0_112 = arith.constant 0 : index
      %c0_113 = arith.constant 0 : index
      %268 = vector.load %arg3[%c0_112, %c0_113] : memref<128x512xbf16, #tpu.memory_space<vmem>>, vector<128x512xbf16>
      %cst_114 = arith.constant dense<0.000000e+00> : vector<1x512xf32>
      %269 = tpu.matmul %267, %268, %cst_114 {dimension_numbers = #tpu.dot_dimension_numbers<[1], [0], [0], [1], [0, 0, 1, 1], [], []>} : vector<1x128xbf16>, vector<128x512xbf16>, vector<1x512xf32> -> vector<1x512xf32>
      %270 = arith.addf %266, %269 : vector<1x512xf32>
      %271 = vector.extract_strided_slice %270 {offsets = [0, 0], sizes = [1, 128], strides = [1, 1]} : vector<1x512xf32> to vector<1x128xf32>
      %cst_115 = arith.constant 5.000000e-01 : f32
      %272 = vector.broadcast %cst_115 : f32 to vector<1x128xf32>
      %273 = arith.mulf %272, %271 : vector<1x128xf32>
      %274 = math.tanh %273 : vector<1x128xf32>
      %cst_116 = arith.constant 5.000000e-01 : f32
      %275 = vector.broadcast %cst_116 : f32 to vector<1x128xf32>
      %276 = arith.mulf %275, %274 : vector<1x128xf32>
      %cst_117 = arith.constant 5.000000e-01 : f32
      %277 = vector.broadcast %cst_117 : f32 to vector<1x128xf32>
      %278 = arith.addf %276, %277 : vector<1x128xf32>
      %279 = vector.extract_strided_slice %270 {offsets = [0, 128], sizes = [1, 128], strides = [1, 1]} : vector<1x512xf32> to vector<1x128xf32>
      %cst_118 = arith.constant 5.000000e-01 : f32
      %280 = vector.broadcast %cst_118 : f32 to vector<1x128xf32>
      %281 = arith.mulf %280, %279 : vector<1x128xf32>
      %282 = math.tanh %281 : vector<1x128xf32>
      %cst_119 = arith.constant 5.000000e-01 : f32
      %283 = vector.broadcast %cst_119 : f32 to vector<1x128xf32>
      %284 = arith.mulf %283, %282 : vector<1x128xf32>
      %cst_120 = arith.constant 5.000000e-01 : f32
      %285 = vector.broadcast %cst_120 : f32 to vector<1x128xf32>
      %286 = arith.addf %284, %285 : vector<1x128xf32>
      %287 = vector.extract_strided_slice %270 {offsets = [0, 256], sizes = [1, 128], strides = [1, 1]} : vector<1x512xf32> to vector<1x128xf32>
      %288 = math.tanh %287 : vector<1x128xf32>
      %289 = vector.extract_strided_slice %270 {offsets = [0, 384], sizes = [1, 128], strides = [1, 1]} : vector<1x512xf32> to vector<1x128xf32>
      %cst_121 = arith.constant 5.000000e-01 : f32
      %290 = vector.broadcast %cst_121 : f32 to vector<1x128xf32>
      %291 = arith.mulf %290, %289 : vector<1x128xf32>
      %292 = math.tanh %291 : vector<1x128xf32>
      %cst_122 = arith.constant 5.000000e-01 : f32
      %293 = vector.broadcast %cst_122 : f32 to vector<1x128xf32>
      %294 = arith.mulf %293, %292 : vector<1x128xf32>
      %cst_123 = arith.constant 5.000000e-01 : f32
      %295 = vector.broadcast %cst_123 : f32 to vector<1x128xf32>
      %296 = arith.addf %294, %295 : vector<1x128xf32>
      %297 = arith.mulf %278, %258 : vector<1x128xf32>
      %298 = arith.mulf %286, %288 : vector<1x128xf32>
      %299 = arith.addf %297, %298 : vector<1x128xf32>
      %300 = math.tanh %299 : vector<1x128xf32>
      %301 = arith.mulf %296, %300 : vector<1x128xf32>
      %c6_i32_124 = arith.constant 6 : i32
      %302 = arith.addi %17, %c6_i32_124 : i32
      %303 = arith.index_cast %302 : i32 to index
      %c0_125 = arith.constant 0 : index
      %304 = vector.load %arg5[%303, %c0_125] : memref<16x128xf32, #tpu.memory_space<vmem>>, vector<1x128xf32>
      tpu.vector_store %arg5[%303, %c0_125], %301 {strides = array<i32>} : memref<16x128xf32, #tpu.memory_space<vmem>>, vector<1x128xf32>,
      %c7_i32 = arith.constant 7 : i32
      %305 = arith.addi %17, %c7_i32 : i32
      %306 = arith.index_cast %305 : i32 to index
      %c0_126 = arith.constant 0 : index
      %307 = vector.load %arg6[%306, %c0_126] : memref<16x512xf32, #tpu.memory_space<vmem>>, vector<1x512xf32>
      %308 = arith.truncf %301 : vector<1x128xf32> to vector<1x128xbf16>
      %c0_127 = arith.constant 0 : index
      %c0_128 = arith.constant 0 : index
      %309 = vector.load %arg3[%c0_127, %c0_128] : memref<128x512xbf16, #tpu.memory_space<vmem>>, vector<128x512xbf16>
      %cst_129 = arith.constant dense<0.000000e+00> : vector<1x512xf32>
      %310 = tpu.matmul %308, %309, %cst_129 {dimension_numbers = #tpu.dot_dimension_numbers<[1], [0], [0], [1], [0, 0, 1, 1], [], []>} : vector<1x128xbf16>, vector<128x512xbf16>, vector<1x512xf32> -> vector<1x512xf32>
      %311 = arith.addf %307, %310 : vector<1x512xf32>
      %312 = vector.extract_strided_slice %311 {offsets = [0, 0], sizes = [1, 128], strides = [1, 1]} : vector<1x512xf32> to vector<1x128xf32>
      %cst_130 = arith.constant 5.000000e-01 : f32
      %313 = vector.broadcast %cst_130 : f32 to vector<1x128xf32>
      %314 = arith.mulf %313, %312 : vector<1x128xf32>
      %315 = math.tanh %314 : vector<1x128xf32>
      %cst_131 = arith.constant 5.000000e-01 : f32
      %316 = vector.broadcast %cst_131 : f32 to vector<1x128xf32>
      %317 = arith.mulf %316, %315 : vector<1x128xf32>
      %cst_132 = arith.constant 5.000000e-01 : f32
      %318 = vector.broadcast %cst_132 : f32 to vector<1x128xf32>
      %319 = arith.addf %317, %318 : vector<1x128xf32>
      %320 = vector.extract_strided_slice %311 {offsets = [0, 128], sizes = [1, 128], strides = [1, 1]} : vector<1x512xf32> to vector<1x128xf32>
      %cst_133 = arith.constant 5.000000e-01 : f32
      %321 = vector.broadcast %cst_133 : f32 to vector<1x128xf32>
      %322 = arith.mulf %321, %320 : vector<1x128xf32>
      %323 = math.tanh %322 : vector<1x128xf32>
      %cst_134 = arith.constant 5.000000e-01 : f32
      %324 = vector.broadcast %cst_134 : f32 to vector<1x128xf32>
      %325 = arith.mulf %324, %323 : vector<1x128xf32>
      %cst_135 = arith.constant 5.000000e-01 : f32
      %326 = vector.broadcast %cst_135 : f32 to vector<1x128xf32>
      %327 = arith.addf %325, %326 : vector<1x128xf32>
      %328 = vector.extract_strided_slice %311 {offsets = [0, 256], sizes = [1, 128], strides = [1, 1]} : vector<1x512xf32> to vector<1x128xf32>
      %329 = math.tanh %328 : vector<1x128xf32>
      %330 = vector.extract_strided_slice %311 {offsets = [0, 384], sizes = [1, 128], strides = [1, 1]} : vector<1x512xf32> to vector<1x128xf32>
      %cst_136 = arith.constant 5.000000e-01 : f32
      %331 = vector.broadcast %cst_136 : f32 to vector<1x128xf32>
      %332 = arith.mulf %331, %330 : vector<1x128xf32>
      %333 = math.tanh %332 : vector<1x128xf32>
      %cst_137 = arith.constant 5.000000e-01 : f32
      %334 = vector.broadcast %cst_137 : f32 to vector<1x128xf32>
      %335 = arith.mulf %334, %333 : vector<1x128xf32>
      %cst_138 = arith.constant 5.000000e-01 : f32
      %336 = vector.broadcast %cst_138 : f32 to vector<1x128xf32>
      %337 = arith.addf %335, %336 : vector<1x128xf32>
      %338 = arith.mulf %319, %299 : vector<1x128xf32>
      %339 = arith.mulf %327, %329 : vector<1x128xf32>
      %340 = arith.addf %338, %339 : vector<1x128xf32>
      %341 = math.tanh %340 : vector<1x128xf32>
      %342 = arith.mulf %337, %341 : vector<1x128xf32>
      %c7_i32_139 = arith.constant 7 : i32
      %343 = arith.addi %17, %c7_i32_139 : i32
      %344 = arith.index_cast %343 : i32 to index
      %c0_140 = arith.constant 0 : index
      %345 = vector.load %arg5[%344, %c0_140] : memref<16x128xf32, #tpu.memory_space<vmem>>, vector<1x128xf32>
      tpu.vector_store %arg5[%344, %c0_140], %342 {strides = array<i32>} : memref<16x128xf32, #tpu.memory_space<vmem>>, vector<1x128xf32>,
      scf.yield %342, %340 : vector<1x128xf32>, vector<1x128xf32>
    }
    %c2_i32_13 = arith.constant 2 : i32
    %c0_14 = arith.constant 0 : index
    %c0_15 = arith.constant 0 : index
    %14 = vector.load %arg7[%c0_14, %c0_15] : memref<1x128xf32, #tpu.memory_space<vmem>>, vector<1x128xf32>
    tpu.vector_store %arg7[%c0_14, %c0_15], %13#0 {strides = array<i32>} : memref<1x128xf32, #tpu.memory_space<vmem>>, vector<1x128xf32>,
    %c0_16 = arith.constant 0 : index
    %c0_17 = arith.constant 0 : index
    %15 = vector.load %arg8[%c0_16, %c0_17] : memref<1x128xf32, #tpu.memory_space<vmem>>, vector<1x128xf32>
    tpu.vector_store %arg8[%c0_16, %c0_17], %13#1 {strides = array<i32>} : memref<1x128xf32, #tpu.memory_space<vmem>>, vector<1x128xf32>,
    return
  }
  func.func @transform_0(%arg0: i32) -> (i32, i32) {
    %c0_i32 = arith.constant 0 : i32
    %c0_i32_0 = arith.constant 0 : i32
    return %arg0, %c0_i32 : i32, i32
  }
  func.func @transform_1(%arg0: i32) -> (i32, i32) {
    %c0_i32 = arith.constant 0 : i32
    %c0_i32_0 = arith.constant 0 : i32
    %c0_i32_1 = arith.constant 0 : i32
    return %c0_i32, %c0_i32_0 : i32, i32
  }
  func.func @transform_2(%arg0: i32) -> (i32, i32) {
    %c0_i32 = arith.constant 0 : i32
    %c0_i32_0 = arith.constant 0 : i32
    %c0_i32_1 = arith.constant 0 : i32
    return %c0_i32, %c0_i32_0 : i32, i32
  }
  func.func @transform_3(%arg0: i32) -> (i32, i32) {
    %c0_i32 = arith.constant 0 : i32
    %c0_i32_0 = arith.constant 0 : i32
    %c0_i32_1 = arith.constant 0 : i32
    return %c0_i32, %c0_i32_0 : i32, i32
  }
  func.func @transform_4(%arg0: i32) -> (i32, i32) {
    %c0_i32 = arith.constant 0 : i32
    %c0_i32_0 = arith.constant 0 : i32
    return %arg0, %c0_i32 : i32, i32
  }
}

</mosaic_0001>

<bundles_post_ra>
// kernel: lstm_forward.1
= control target key start
LH: loop header
LB: loop body
LE: loop exit
PB: predicated region body
PF: predicated region fallthrough
CT: control target
= control target key end

     0   :  { %s3811_s15 = smov 0   ;;  %s4542_s0 = inlined_call_operand.vmem [shape: bf16[48,16], index: 0, kind: input, shape index: {}]   ;;  %s4543_s1 = inlined_call_operand.vmem [shape: bf16[16,512], index: 1, kind: input, shape index: {}]   ;;  %s4544_s2 = inlined_call_operand.vmem [shape: bf16[128,512], index: 2, kind: input, shape index: {}]   ;;  %s4545_s3 = inlined_call_operand.vmem [shape: f32[1,512], index: 3, kind: input, shape index: {}]   ;;  %s4546_s4 = inlined_call_operand.vmem [shape: f32[48,128], index: 4, kind: output, shape index: {}]  }
   0x1 LB: > { %s3217_s16 = sadd.s32 4294967295, %s3768_s15   ;;  %p3221_p0 = scmp.ge.s32.totalorder %s3768_s15, 1  ;;  %s3768_s15 = sphi %s3811_s15, %s14_s15  }
   0x2   : > { %p163_p1 = scmp.lt.s32.totalorder %s3768_s15, 4 }
   0x4   : > { %p164_p2 = pnand %p3221_p0, %p163_p1 }
   0x5   : > { %s3222_s17 = sshll.u32 (!%p164_p2), %s3217_s16, 1  ;;  %p3226_p4 = scmp.ne.s32.totalorder (!%p164_p2), %s3217_s16, 0 }
   0x6   : > { %167 = sbr.rel (%p164_p2) target bundleno = 2365 (0x93d), region = 36  ;;  %p190_p3 = scmp.lt.s32.totalorder (!%p164_p2), %s3222_s17, 5 }
   0xd   : > { %s4550_s17 = smov (!%p190_p3, %s3222_s17), 5  ;;  %205 = sbr.rel (%p3226_p4) target bundleno = 20 (0x14), region = 40 }
   0xe   : > { %s3223_s18 = sshll.u32 %s4550_s17, 2  ;;  %s3225_s19 = sshll.u32 %s4550_s17, 3  ;;  %v3782_v0 = vmov (!%p3226_p4), 0.0  }
   0xf   : > { %s193_s22 = scalar_lea.vmem %s4542_s0, %s3223_s18  ;;  %s3825_s25 = scalar_lea.vmem %s4546_s4, %s3225_s19  ;;  %206 = vst [vmem:[#allocation3] sm:$0x1] (!%p3226_p4), %v3782_v0  ;;  %207 = vst [vmem:[#allocation4] sm:$0x1] (!%p3226_p4), %v3782_v0 }
  0x14 PF: > { %v3567_v1 = vld [vmem:[%s4543_s1 + $0x4] ss:$16 sps:$4 sm:$0xff]   ;;  %v3569_v2 = vld [vmem:[%s4543_s1 + $0xc] ss:$16 sps:$4 sm:$0xff]   ;;  %v3783_v3 = vmov 0   ;;  %vm261_vm0 = vcmask 130048   ;;  %v216_v9 = vlaneseq }
  0x15   : > { %297 = vmatprep.mubr.bf16.mxu0 %v3783_v3  ;;  %340 = vmatprep.mubr.bf16.mxu1 %v3783_v3  ;;  %v3571_v4 = vld [vmem:[%s4543_s1] ss:$16 sps:$4 sm:$0xff]   ;;  %v3572_v5 = vld [vmem:[%s4543_s1 + $0x8] ss:$16 sps:$4 sm:$0xff]   ;;  %s3852_s10 = smov 0  }
  0x16   : > { %265 = vmatprep.subr.bf16.mxu0 %v3567_v1  ;;  %308 = vmatprep.subr.bf16.mxu1 %v3569_v2  ;;  %v3573_v6 = vld [vmem:[%s193_s22] sm:$0xff]   ;;  %v3839_v10 = vshrl.u32 %v216_v9, 7 }
  0x17   : > { %266 = vmatpush1.bf16.msra.mxu0 %v3571_v4  ;;  %309 = vmatpush1.bf16.msra.mxu1 %v3572_v5  ;;  %v359_v7 = vld [vmem:[#allocation3] sm:$0x1]   ;;  %v360_v8 = vld [vmem:[#allocation4] sm:$0x1]  }
  0x18   : > { %v218_v11 = vsub.s32 0, %v3839_v10  ;;  %v226_v12 = vsub.s32 2, %v3839_v10  ;;  %v214_v13 = vld [vmem:[%s4545_s3] sm:$0xf]  ;;  %v222_v14 = vsub.s32 1, %v3839_v10  ;;  %v230_v15 = vsub.s32 3, %v3839_v10 }
  0x1a   : > { %3232 = vmatmul.mubr.msk.bf16.vlgmr.msra.gmra.mrb[0].mxu0 %vm261_vm0, %v3573_v6  ;;  %3233 = vmatmul.mubr.msk.bf16.vlgmr.msra.gmra.mrb[0].mxu1 %vm261_vm0, %v3573_v6  ;;  %v219_v16 = vrot.slane %v214_v13, %v218_v11  ;;  %v227_v17 = vrot.slane %v214_v13, %v226_v12  ;;  %v223_v18 = vrot.slane %v214_v13, %v222_v14 }
  0x1b   : > { %v231_v19 = vrot.slane %v214_v13, %v230_v15 }
  0xed   : > { %v299_v20 = vpop.f32.mrb[0].mxu0  ;;  %v342_v21 = vpop.f32.mrb[0].mxu1 }
  0xee   : > { %v300_v22 = vadd.f32 %v299_v20, %v219_v16  ;;  %v343_v23 = vadd.f32 %v342_v21, %v227_v17  ;;  %v301_v24 = vpop.f32.mrb[1].mxu0  ;;  %v344_v25 = vpop.f32.mrb[1].mxu1 }
  0xef   : > { %v302_v26 = vadd.f32 %v301_v24, %v223_v18  ;;  %v345_v27 = vadd.f32 %v344_v25, %v231_v19  ;;  %v303_v28 = vpop.f32.mrb[2].mxu0  ;;  %v346_v29 = vpop.f32.mrb[2].mxu1 }
  0xf0   : > { %351 = vst [vmem:[#allocation2] sm:$0xff] %v300_v22  ;;  %353 = vst [vmem:[#allocation2 + $0x10] sm:$0xff] %v343_v23  ;;  %v304_v30 = vadd.f32 %v303_v28, %v219_v16  ;;  %v347_v31 = vadd.f32 %v346_v29, %v227_v17  ;;  %v305_v32 = vpop.f32.mrb[3].mxu0  ;;  %v348_v33 = vpop.f32.mrb[3].mxu1 }
  0xf1   : > { %352 = vst [vmem:[#allocation2 + $0x8] sm:$0xff] %v302_v26  ;;  %354 = vst [vmem:[#allocation2 + $0x18] sm:$0xff] %v345_v27  ;;  %v306_v34 = vadd.f32 %v305_v32, %v223_v18  ;;  %v349_v35 = vadd.f32 %v348_v33, %v231_v19 }
  0xf2   : > { %355 = vst [vmem:[#allocation2 + $0x20] sm:$0xff] %v304_v30  ;;  %357 = vst [vmem:[#allocation2 + $0x30] sm:$0xff] %v347_v31 }
  0xf3   : > { %356 = vst [vmem:[#allocation2 + $0x28] sm:$0xff] %v306_v34  ;;  %358 = vst [vmem:[#allocation2 + $0x38] sm:$0xff] %v349_v35 }
  0xf4 LB: >> { %v3866_v36 = vld [vmem:[%s4544_s2 + $0x4] ss:$16 sps:$4 sm:$0xff]   ;;  %v3871_v37 = vld [vmem:[%s4544_s2 + $0xc] ss:$16 sps:$4 sm:$0xff]   ;;  %v3784_v38 = vmov 0   ;;  %v376_v5 = vpack.c.bf16 %v3776_v7, %v3776_v7  ;;  %s4096_s5 = sshll.u32 %s3780_s10, 3  ;;  %s3780_s10 = sphi %s3852_s10, %s366_s10   ;;  %v3776_v7 = vphi %v359_v7, %v4548_v7   ;;  %v3772_v8 = vphi %v360_v8, %v4547_v8  }
  0xf5   : >> { %601 = vmatprep.mubr.bf16.mxu0 %v3784_v38  ;;  %642 = vmatprep.mubr.bf16.mxu1 %v3784_v38  ;;  %v3879_v39 = vld [vmem:[%s4544_s2] ss:$16 sps:$4 sm:$0xff]   ;;  %v3884_v40 = vld [vmem:[%s4544_s2 + $0x8] ss:$16 sps:$4 sm:$0xff]   ;;  %v3890_v41 = vld [vmem:[%s4544_s2 + $0x24] ss:$16 sps:$4 sm:$0xff]   ;;  %s4111_s9 = scalar_lea.vmem %s3825_s25, %s4096_s5 }
  0xf6   : >> { %569 = vmatprep.subr.bf16.mxu0 %v3866_v36  ;;  %610 = vmatprep.subr.bf16.mxu1 %v3871_v37  ;;  %v3897_v42 = vld [vmem:[%s4544_s2 + $0x2c] ss:$16 sps:$4 sm:$0xff]   ;;  %v3902_v43 = vld [vmem:[%s4544_s2 + $0x20] ss:$16 sps:$4 sm:$0xff]   ;;  %v3908_v44 = vld [vmem:[%s4544_s2 + $0x28] ss:$16 sps:$4 sm:$0xff]  }
  0xf7   : >> { %570 = vmatpush1.bf16.msra.mxu0 %v3879_v39  ;;  %611 = vmatpush1.bf16.msra.mxu1 %v3884_v40  ;;  %v3914_v45 = vld [vmem:[%s4544_s2 + $0x44] ss:$16 sps:$4 sm:$0xff]   ;;  %v3919_v46 = vld [vmem:[%s4544_s2 + $0x4c] ss:$16 sps:$4 sm:$0xff]   ;;  %v3924_v47 = vld [vmem:[%s4544_s2 + $0x40] ss:$16 sps:$4 sm:$0xff]  }
  0xf8   : >> { %571 = vmatprep.subr.bf16.mxu0 %v3890_v41  ;;  %612 = vmatprep.subr.bf16.mxu1 %v3897_v42  ;;  %v3929_v48 = vld [vmem:[%s4544_s2 + $0x48] ss:$16 sps:$4 sm:$0xff]   ;;  %v3936_v49 = vld [vmem:[%s4544_s2 + $0x64] ss:$16 sps:$4 sm:$0xff]   ;;  %v3943_v50 = vld [vmem:[%s4544_s2 + $0x6c] ss:$16 sps:$4 sm:$0xff]  }
  0xf9   : >> { %v3948_v51 = vld [vmem:[%s4544_s2 + $0x60] ss:$16 sps:$4 sm:$0xff]   ;;  %v3955_v52 = vld [vmem:[%s4544_s2 + $0x68] ss:$16 sps:$4 sm:$0xff]   ;;  %v3960_v53 = vld [vmem:[%s4544_s2 + $0x84] ss:$16 sps:$4 sm:$0xff]  }
  0xfa   : >> { %v3967_v54 = vld [vmem:[%s4544_s2 + $0x8c] ss:$16 sps:$4 sm:$0xff]   ;;  %v3972_v55 = vld [vmem:[%s4544_s2 + $0x80] ss:$16 sps:$4 sm:$0xff]   ;;  %v3977_v56 = vld [vmem:[%s4544_s2 + $0x88] ss:$16 sps:$4 sm:$0xff]  }
  0xfb   : >> { %572 = vmatpush1.bf16.msra.mxu0 %v3902_v43  ;;  %613 = vmatpush1.bf16.msra.mxu1 %v3908_v44  ;;  %v3984_v57 = vld [vmem:[%s4544_s2 + $0xa4] ss:$16 sps:$4 sm:$0xff]   ;;  %v3991_v58 = vld [vmem:[%s4544_s2 + $0xac] ss:$16 sps:$4 sm:$0xff]   ;;  %v3996_v59 = vld [vmem:[%s4544_s2 + $0xa0] ss:$16 sps:$4 sm:$0xff]  }
  0xfc   : >> { %573 = vmatprep.subr.bf16.mxu0 %v3914_v45  ;;  %614 = vmatprep.subr.bf16.mxu1 %v3919_v46  ;;  %v4003_v60 = vld [vmem:[%s4544_s2 + $0xa8] ss:$16 sps:$4 sm:$0xff]   ;;  %v4008_v61 = vld [vmem:[%s4544_s2 + $0xc4] ss:$16 sps:$4 sm:$0xff]   ;;  %v4015_v62 = vld [vmem:[%s4544_s2 + $0xcc] ss:$16 sps:$4 sm:$0xff]  }
  0xfd   : >> { %v4020_v63 = vld [vmem:[%s4544_s2 + $0xc0] ss:$16 sps:$4 sm:$0xff]   ;;  %v4025_v0 = vld [vmem:[%s4544_s2 + $0xc8] ss:$16 sps:$4 sm:$0xff]   ;;  %v4030_v1 = vld [vmem:[%s4544_s2 + $0xe4] ss:$16 sps:$4 sm:$0xff]  }
  0xfe   : >> { %v4035_v2 = vld [vmem:[%s4544_s2 + $0xec] ss:$16 sps:$4 sm:$0xff]   ;;  %v4044_v3 = vld [vmem:[%s4544_s2 + $0xe0] ss:$16 sps:$4 sm:$0xff]   ;;  %v4049_v4 = vld [vmem:[%s4544_s2 + $0xe8] ss:$16 sps:$4 sm:$0xff]  }
  0xff   : >> { %574 = vmatpush1.bf16.msra.mxu0 %v3924_v47  ;;  %615 = vmatpush1.bf16.msra.mxu1 %v3929_v48  ;;  %v3785_v6 = vmov 1966171168   ;;  %s370_s6 = sshra.s32 %s4096_s5, 3  ;;  %s708_s11 = sadd.s32 1, %s4096_s5 }
 0x100   : >> { %575 = vmatprep.subr.bf16.mxu0 %v3936_v49  ;;  %616 = vmatprep.subr.bf16.mxu1 %v3943_v50  ;;  %v658_v7 = vunpack.c.l.s4 %v3785_v6  ;;  %s3523_s7 = sshll.u32 %s370_s6, 5  ;;  %s709_s12 = sshra.s32 %s708_s11, 3 }
 0x101   : >> { %s374_s8 = scalar_lea.vmem [#allocation2], %s3523_s7  ;;  %s712_s13 = sand.u32 7, %s708_s11 }
 0x102   : >> { %v659_v9 = vunpack.c.0.s8 %v658_v7  ;;  %v375_v25 = vld [vmem:[%s374_s8] ss:$8 sm:$0xf]  ;;  %s3524_s14 = sshll.u32 %s709_s12, 5  ;;  %s1050_s18 = sadd.s32 2, %s4096_s5 }
 0x103   : >> { %576 = vmatpush1.bf16.msra.mxu0 %v3948_v51  ;;  %617 = vmatpush1.bf16.msra.mxu1 %v3955_v52  ;;  %s715_s16 = sadd.s32 %s3524_s14, %s712_s13  ;;  %s1051_s19 = sshra.s32 %s1050_s18, 3 }
 0x104   : >> { %577 = vmatprep.subr.bf16.mxu0 %v3960_v53  ;;  %618 = vmatprep.subr.bf16.mxu1 %v3967_v54  ;;  %v4100_v13 = vsub.s32 %v659_v9, %v3839_v10  ;;  %s716_s17 = scalar_lea.vmem [#allocation2], %s715_s16  ;;  %s1054_s20 = sand.u32 7, %s1050_s18 }
 0x105   : >> { %s3525_s21 = sshll.u32 %s1051_s19, 5  ;;  %s1392_s26 = sadd.s32 3, %s4096_s5 }
 0x106   : >> { %s1057_s22 = sadd.s32 %s3525_s21, %s1054_s20  ;;  %s1393_s27 = sshra.s32 %s1392_s26, 3 }
 0x107   : >> { %578 = vmatpush1.bf16.msra.mxu0 %v3972_v55  ;;  %619 = vmatpush1.bf16.msra.mxu1 %v3977_v56  ;;  %s1058_s23 = scalar_lea.vmem [#allocation2], %s1057_s22  ;;  %s1396_s28 = sand.u32 7, %s1392_s26 }
 0x108   : >> { %579 = vmatprep.subr.bf16.mxu0 %v3984_v57  ;;  %620 = vmatprep.subr.bf16.mxu1 %v3991_v58  ;;  %s3526_s29 = sshll.u32 %s1393_s27, 5  ;;  %s1734_s7 = sadd.s32 4, %s4096_s5 }
 0x109   : >> { %s1399_s30 = sadd.s32 %s3526_s29, %s1396_s28  ;;  %s1735_s8 = sshra.s32 %s1734_s7, 3 }
 0x10a   : >> { %s1400_s6 = scalar_lea.vmem [#allocation2], %s1399_s30  ;;  %s1738_s11 = sand.u32 7, %s1734_s7 }
 0x10b   : >> { %580 = vmatpush1.bf16.msra.mxu0 %v3996_v59  ;;  %621 = vmatpush1.bf16.msra.mxu1 %v4003_v60  ;;  %s3527_s12 = sshll.u32 %s1735_s8, 5  ;;  %s2076_s16 = sadd.s32 5, %s4096_s5 }
 0x10c   : >> { %581 = vmatprep.subr.bf16.mxu0 %v4008_v61  ;;  %622 = vmatprep.subr.bf16.mxu1 %v4015_v62  ;;  %s1741_s13 = sadd.s32 %s3527_s12, %s1738_s11  ;;  %s2080_s18 = sand.u32 7, %s2076_s16 }
 0x10d   : >> { %s1742_s14 = scalar_lea.vmem [#allocation2], %s1741_s13  ;;  %s2418_s22 = sadd.s32 6, %s4096_s5 }
 0x10e   : >> { %s2422_s24 = sand.u32 7, %s2418_s22  ;;  %s2760_s29 = sadd.s32 7, %s4096_s5 }
 0x10f   : >> { %582 = vmatpush1.bf16.msra.mxu0 %v4020_v63  ;;  %623 = vmatpush1.bf16.msra.mxu1 %v4025_v0  ;;  %s2761_s30 = sshra.s32 %s2760_s29, 3  ;;  %s366_s10 = sadd.s32 1, %s3780_s10  }
 0x110   : >> { %583 = vmatprep.subr.bf16.mxu0 %v4030_v1  ;;  %624 = vmatprep.subr.bf16.mxu1 %v4035_v2  ;;  %s3530_s7 = sshll.u32 %s2761_s30, 5  ;;  %p363_p5 = scmp.ge.s32.totalorder %s366_s10, 2  }
 0x113   : >> { %584 = vmatpush1.bf16.msra.mxu0 %v4044_v3  ;;  %625 = vmatpush1.bf16.msra.mxu1 %v4049_v4 }
 0x114   : >> { %911 = vmatprep.subr.bf16.mxu0 %v3866_v36  ;;  %952 = vmatprep.subr.bf16.mxu1 %v3871_v37 }
 0x116   : >> { %602 = vmatmul.mubr.bf16.vlgmr.msra.gmra.mrb[0].mxu0 %v376_v5  ;;  %643 = vmatmul.mubr.bf16.vlgmr.msra.gmra.mrb[0].mxu1 %v376_v5 }
 0x117   : >> { %912 = vmatpush1.bf16.msra.mxu0 %v3879_v39  ;;  %953 = vmatpush1.bf16.msra.mxu1 %v3884_v40 }
 0x118   : >> { %913 = vmatprep.subr.bf16.mxu0 %v3890_v41  ;;  %954 = vmatprep.subr.bf16.mxu1 %v3897_v42 }
 0x119   : >> { %943 = vmatprep.mubr.bf16.mxu0 %v3784_v38  ;;  %984 = vmatprep.mubr.bf16.mxu1 %v3784_v38 }
 0x11b   : >> { %914 = vmatpush1.bf16.msra.mxu0 %v3902_v43  ;;  %955 = vmatpush1.bf16.msra.mxu1 %v3908_v44 }
 0x11c   : >> { %915 = vmatprep.subr.bf16.mxu0 %v3914_v45  ;;  %956 = vmatprep.subr.bf16.mxu1 %v3919_v46 }
 0x11f   : >> { %916 = vmatpush1.bf16.msra.mxu0 %v3924_v47  ;;  %957 = vmatpush1.bf16.msra.mxu1 %v3929_v48 }
 0x120   : >> { %917 = vmatprep.subr.bf16.mxu0 %v3936_v49  ;;  %958 = vmatprep.subr.bf16.mxu1 %v3943_v50 }
 0x123   : >> { %918 = vmatpush1.bf16.msra.mxu0 %v3948_v51  ;;  %959 = vmatpush1.bf16.msra.mxu1 %v3955_v52 }
 0x124   : >> { %919 = vmatprep.subr.bf16.mxu0 %v3960_v53  ;;  %960 = vmatprep.subr.bf16.mxu1 %v3967_v54 }
 0x127   : >> { %920 = vmatpush1.bf16.msra.mxu0 %v3972_v55  ;;  %961 = vmatpush1.bf16.msra.mxu1 %v3977_v56 }
 0x128   : >> { %921 = vmatprep.subr.bf16.mxu0 %v3984_v57  ;;  %962 = vmatprep.subr.bf16.mxu1 %v3991_v58 }
 0x12b   : >> { %922 = vmatpush1.bf16.msra.mxu0 %v3996_v59  ;;  %963 = vmatpush1.bf16.msra.mxu1 %v4003_v60 }
 0x12c   : >> { %923 = vmatprep.subr.bf16.mxu0 %v4008_v61  ;;  %964 = vmatprep.subr.bf16.mxu1 %v4015_v62 }
 0x12f   : >> { %924 = vmatpush1.bf16.msra.mxu0 %v4020_v63  ;;  %965 = vmatpush1.bf16.msra.mxu1 %v4025_v0 }
 0x130   : >> { %925 = vmatprep.subr.bf16.mxu0 %v4030_v1  ;;  %966 = vmatprep.subr.bf16.mxu1 %v4035_v2 }
 0x133   : >> { %926 = vmatpush1.bf16.msra.mxu0 %v4044_v3  ;;  %967 = vmatpush1.bf16.msra.mxu1 %v4049_v4 }
 0x134   : >> { %1253 = vmatprep.subr.bf16.mxu0 %v3866_v36  ;;  %1294 = vmatprep.subr.bf16.mxu1 %v3871_v37 }
 0x1e9   : >> { %v603_v11 = vpop.f32.mrb[0].mxu0  ;;  %v644_v12 = vpop.f32.mrb[0].mxu1 }
 0x1ea   : >> { %v605_v14 = vpop.f32.mrb[1].mxu0  ;;  %v646_v15 = vpop.f32.mrb[1].mxu1 }
 0x1eb   : >> { %v655_v16 = vcombine.low %v603_v11, %v605_v14  ;;  %v656_v17 = vcombine.low %v644_v12, %v646_v15  ;;  %v607_v18 = vpop.f32.mrb[2].mxu0  ;;  %v648_v19 = vpop.f32.mrb[2].mxu1 }
 0x1ec   : >> { %v608_v20 = vpop.f32.mrb[3].mxu0  ;;  %v649_v21 = vpop.f32.mrb[3].mxu1 }
 0x1ed   : >> { %v663_v22 = vrot.slane %v655_v16, %v4100_v13  ;;  %v670_v23 = vrot.slane %v656_v17, %v4100_v13 }
 0x1ef   : >> { %v671_v24 = vcombine.low %v663_v22, %v670_v23 }
 0x1f1   : >> { %v678_v26 = vrot.slane %v671_v24, %v4100_v13 }
 0x1f3   : >> { %v680_v27 = vadd.f32 %v678_v26, %v375_v25 }
 0x1f5   : >> { %v681_v28 = vmul.f32 0.5, %v680_v27  ;;  %v686_v29 = vrot.slane %v680_v27, 1  ;;  %v692_v31 = vrot.slane %v680_v27, 2  ;;  %v695_v32 = vrot.slane %v680_v27, 3 }
 0x1f7   : >> { %3670 = vtanh.f32 %v681_v28  ;;  %v688_v30 = vmul.f32 0.5, %v686_v29  ;;  %v697_v33 = vmul.f32 0.5, %v695_v32  ;;  %v717_v32 = vld [vmem:[%s716_s17] ss:$8 sm:$0xf]  ;;  %s2077_s17 = sshra.s32 %s2076_s16, 3 }
 0x1f8   : >> { %s3528_s19 = sshll.u32 %s2077_s17, 5 }
 0x1f9   : >> { %3672 = vtanh.f32 %v688_v30  ;;  %s2083_s20 = sadd.s32 %s3528_s19, %s2080_s18 }
 0x1fa   : >> { %3674 = vtanh.f32 %v692_v31  ;;  %s2084_s21 = scalar_lea.vmem [#allocation2], %s2083_s20 }
 0x1fb   : >> { %3676 = vtanh.f32 %v697_v33 }
 0x201   : >> { %v3671_v34 = vpop.eup %3670 }
 0x202   : >> { %v683_v35 = vmul.f32 0.5, %v3671_v34 }
 0x203   : >> { %v3673_v5 = vpop.eup %3672 }
 0x204   : >> { %v684_v6 = vadd.f32 0.5, %v683_v35  ;;  %v690_v7 = vmul.f32 0.5, %v3673_v5  ;;  %v3675_v11 = vpop.eup %3674 }
 0x205   : >> { %v3677_v16 = vpop.eup %3676 }
 0x206   : >> { %v691_v9 = vadd.f32 0.5, %v690_v7  ;;  %v701_v12 = vmul.f32 %v3772_v8, %v684_v6  ;;  %v699_v17 = vmul.f32 0.5, %v3677_v16 }
 0x208   : >> { %v702_v14 = vmul.f32 %v3675_v11, %v691_v9  ;;  %v700_v18 = vadd.f32 0.5, %v699_v17 }
 0x20a   : >> { %v4106_v15 = vadd.f32 %v702_v14, %v701_v12 }
 0x20c   : >> { %3678 = vtanh.f32 %v4106_v15 }
 0x216   : >> { %v3679_v19 = vpop.eup %3678 }
 0x217   : >> { %v705_v20 = vmul.f32 %v3679_v19, %v700_v18 }
 0x219   : >> { %707 = vst [vmem:[%s4111_s9] sm:$0x1] %v705_v20  ;;  %v718_v21 = vpack.c.bf16 %v705_v20, %v705_v20 }
 0x21b   : >> { %944 = vmatmul.mubr.bf16.vlgmr.msra.gmra.mrb[4].mxu0 %v718_v21  ;;  %985 = vmatmul.mubr.bf16.vlgmr.msra.gmra.mrb[4].mxu1 %v718_v21 }
 0x21c   : >> { %1254 = vmatpush1.bf16.msra.mxu0 %v3879_v39  ;;  %1295 = vmatpush1.bf16.msra.mxu1 %v3884_v40 }
 0x21d   : >> { %1255 = vmatprep.subr.bf16.mxu0 %v3890_v41  ;;  %1296 = vmatprep.subr.bf16.mxu1 %v3897_v42 }
 0x21e   : >> { %1285 = vmatprep.mubr.bf16.mxu0 %v3784_v38  ;;  %1326 = vmatprep.mubr.bf16.mxu1 %v3784_v38 }
 0x220   : >> { %1256 = vmatpush1.bf16.msra.mxu0 %v3902_v43  ;;  %1297 = vmatpush1.bf16.msra.mxu1 %v3908_v44 }
 0x221   : >> { %1257 = vmatprep.subr.bf16.mxu0 %v3914_v45  ;;  %1298 = vmatprep.subr.bf16.mxu1 %v3919_v46 }
 0x224   : >> { %1258 = vmatpush1.bf16.msra.mxu0 %v3924_v47  ;;  %1299 = vmatpush1.bf16.msra.mxu1 %v3929_v48 }
 0x225   : >> { %1259 = vmatprep.subr.bf16.mxu0 %v3936_v49  ;;  %1300 = vmatprep.subr.bf16.mxu1 %v3943_v50 }
 0x228   : >> { %1260 = vmatpush1.bf16.msra.mxu0 %v3948_v51  ;;  %1301 = vmatpush1.bf16.msra.mxu1 %v3955_v52 }
 0x229   : >> { %1261 = vmatprep.subr.bf16.mxu0 %v3960_v53  ;;  %1302 = vmatprep.subr.bf16.mxu1 %v3967_v54 }
 0x22c   : >> { %1262 = vmatpush1.bf16.msra.mxu0 %v3972_v55  ;;  %1303 = vmatpush1.bf16.msra.mxu1 %v3977_v56 }
 0x22d   : >> { %1263 = vmatprep.subr.bf16.mxu0 %v3984_v57  ;;  %1304 = vmatprep.subr.bf16.mxu1 %v3991_v58 }
 0x230   : >> { %1264 = vmatpush1.bf16.msra.mxu0 %v3996_v59  ;;  %1305 = vmatpush1.bf16.msra.mxu1 %v4003_v60 }
 0x231   : >> { %1265 = vmatprep.subr.bf16.mxu0 %v4008_v61  ;;  %1306 = vmatprep.subr.bf16.mxu1 %v4015_v62 }
 0x234   : >> { %1266 = vmatpush1.bf16.msra.mxu0 %v4020_v63  ;;  %1307 = vmatpush1.bf16.msra.mxu1 %v4025_v0 }
 0x235   : >> { %1267 = vmatprep.subr.bf16.mxu0 %v4030_v1  ;;  %1308 = vmatprep.subr.bf16.mxu1 %v4035_v2 }
 0x238   : >> { %1268 = vmatpush1.bf16.msra.mxu0 %v4044_v3  ;;  %1309 = vmatpush1.bf16.msra.mxu1 %v4049_v4 }
 0x239   : >> { %1595 = vmatprep.subr.bf16.mxu0 %v3866_v36  ;;  %1636 = vmatprep.subr.bf16.mxu1 %v3871_v37 }
 0x2ee   : >> { %v945_v8 = vpop.f32.mrb[4].mxu0  ;;  %v986_v22 = vpop.f32.mrb[4].mxu1 }
 0x2ef   : >> { %v947_v23 = vpop.f32.mrb[5].mxu0  ;;  %v988_v24 = vpop.f32.mrb[5].mxu1 }
 0x2f0   : >> { %v997_v25 = vcombine.low %v945_v8, %v947_v23  ;;  %v998_v26 = vcombine.low %v986_v22, %v988_v24  ;;  %v949_v27 = vpop.f32.mrb[6].mxu0  ;;  %v990_v28 = vpop.f32.mrb[6].mxu1 }
 0x2f1   : >> { %v950_v29 = vpop.f32.mrb[7].mxu0  ;;  %v991_v30 = vpop.f32.mrb[7].mxu1 }
 0x2f2   : >> { %v1005_v31 = vrot.slane %v997_v25, %v4100_v13  ;;  %v1012_v36 = vrot.slane %v998_v26, %v4100_v13 }
 0x2f4   : >> { %v1013_v37 = vcombine.low %v1005_v31, %v1012_v36 }
 0x2f6   : >> { %v1020_v33 = vrot.slane %v1013_v37, %v4100_v13 }
 0x2f8   : >> { %v1022_v34 = vadd.f32 %v1020_v33, %v717_v32 }
 0x2fa   : >> { %v1023_v35 = vmul.f32 0.5, %v1022_v34  ;;  %v1028_v5 = vrot.slane %v1022_v34, 1  ;;  %v1034_v7 = vrot.slane %v1022_v34, 2  ;;  %v1037_v9 = vrot.slane %v1022_v34, 3  ;;  %v4203_v34 = vld [vmem:[%s4544_s2 + $0x4] ss:$16 sps:$4 sm:$0xff]  }
 0x2fc   : >> { %3680 = vtanh.f32 %v1023_v35  ;;  %v1030_v6 = vmul.f32 0.5, %v1028_v5  ;;  %v1039_v11 = vmul.f32 0.5, %v1037_v9  ;;  %v4208_v35 = vld [vmem:[%s4544_s2 + $0xc] ss:$16 sps:$4 sm:$0xff]   ;;  %v4213_v5 = vld [vmem:[%s4544_s2] ss:$16 sps:$4 sm:$0xff]  }
 0x2fd   : >> { %v4232_v9 = vld [vmem:[%s4544_s2 + $0x2c] ss:$16 sps:$4 sm:$0xff]  }
 0x2fe   : >> { %3682 = vtanh.f32 %v1030_v6  ;;  %v4218_v6 = vld [vmem:[%s4544_s2 + $0x8] ss:$16 sps:$4 sm:$0xff]  }
 0x2ff   : >> { %3684 = vtanh.f32 %v1034_v7  ;;  %v4227_v7 = vld [vmem:[%s4544_s2 + $0x24] ss:$16 sps:$4 sm:$0xff]  }
 0x300   : >> { %3686 = vtanh.f32 %v1039_v11  ;;  %v4237_v11 = vld [vmem:[%s4544_s2 + $0x20] ss:$16 sps:$4 sm:$0xff]  }
 0x306   : >> { %v3681_v12 = vpop.eup %3680 }
 0x307   : >> { %v1025_v14 = vmul.f32 0.5, %v3681_v12  ;;  %v4242_v12 = vld [vmem:[%s4544_s2 + $0x28] ss:$16 sps:$4 sm:$0xff]  }
 0x308   : >> { %v3683_v16 = vpop.eup %3682 }
 0x309   : >> { %v1026_v17 = vadd.f32 0.5, %v1025_v14  ;;  %v1032_v18 = vmul.f32 0.5, %v3683_v16  ;;  %v3685_v20 = vpop.eup %3684  ;;  %v4251_v14 = vld [vmem:[%s4544_s2 + $0x44] ss:$16 sps:$4 sm:$0xff]   ;;  %v4256_v16 = vld [vmem:[%s4544_s2 + $0x4c] ss:$16 sps:$4 sm:$0xff]  }
 0x30a   : >> { %v3687_v23 = vpop.eup %3686 }
 0x30b   : >> { %v1033_v19 = vadd.f32 0.5, %v1032_v18  ;;  %v1043_v21 = vmul.f32 %v1026_v17, %v4106_v15  ;;  %v1041_v24 = vmul.f32 0.5, %v3687_v23  ;;  %v4261_v17 = vld [vmem:[%s4544_s2 + $0x40] ss:$16 sps:$4 sm:$0xff]   ;;  %v4266_v18 = vld [vmem:[%s4544_s2 + $0x48] ss:$16 sps:$4 sm:$0xff]  }
 0x30c   : >> { %v4304_v23 = vld [vmem:[%s4544_s2 + $0x80] ss:$16 sps:$4 sm:$0xff]  }
 0x30d   : >> { %v1044_v8 = vmul.f32 %v3685_v20, %v1033_v19  ;;  %v1042_v25 = vadd.f32 0.5, %v1041_v24  ;;  %v4275_v19 = vld [vmem:[%s4544_s2 + $0x64] ss:$16 sps:$4 sm:$0xff]   ;;  %v4280_v20 = vld [vmem:[%s4544_s2 + $0x6c] ss:$16 sps:$4 sm:$0xff]  }
 0x30e   : >> { %v4309_v24 = vld [vmem:[%s4544_s2 + $0x88] ss:$16 sps:$4 sm:$0xff]  }
 0x30f   : >> { %v4153_v22 = vadd.f32 %v1044_v8, %v1043_v21  ;;  %v4285_v21 = vld [vmem:[%s4544_s2 + $0x60] ss:$16 sps:$4 sm:$0xff]   ;;  %v4290_v8 = vld [vmem:[%s4544_s2 + $0x68] ss:$16 sps:$4 sm:$0xff]  }
 0x311   : >> { %3688 = vtanh.f32 %v4153_v22 }
 0x31b   : >> { %v3689_v26 = vpop.eup %3688 }
 0x31c   : >> { %v1047_v27 = vmul.f32 %v3689_v26, %v1042_v25  ;;  %v4314_v25 = vld [vmem:[%s4544_s2 + $0x8c] ss:$16 sps:$4 sm:$0xff]   ;;  %v4320_v26 = vld [vmem:[%s4544_s2 + $0xa4] ss:$16 sps:$4 sm:$0xff]  }
 0x31e   : >> { %3304 = vst [vmem:[%s4111_s9 + $0x1] sm:$0x1] %v1047_v27  ;;  %v1060_v28 = vpack.c.bf16 %v1047_v27, %v1047_v27  ;;  %v4325_v27 = vld [vmem:[%s4544_s2 + $0xac] ss:$16 sps:$4 sm:$0xff]  }
 0x320   : >> { %1286 = vmatmul.mubr.bf16.vlgmr.msra.gmra.mrb[8].mxu0 %v1060_v28  ;;  %1327 = vmatmul.mubr.bf16.vlgmr.msra.gmra.mrb[8].mxu1 %v1060_v28  ;;  %v4333_v28 = vld [vmem:[%s4544_s2 + $0xa0] ss:$16 sps:$4 sm:$0xff]  }
 0x321   : >> { %1596 = vmatpush1.bf16.msra.mxu0 %v3879_v39  ;;  %1637 = vmatpush1.bf16.msra.mxu1 %v3884_v40 }
 0x322   : >> { %1597 = vmatprep.subr.bf16.mxu0 %v3890_v41  ;;  %1638 = vmatprep.subr.bf16.mxu1 %v3897_v42 }
 0x323   : >> { %1627 = vmatprep.mubr.bf16.mxu0 %v3784_v38  ;;  %1668 = vmatprep.mubr.bf16.mxu1 %v3784_v38 }
 0x325   : >> { %1598 = vmatpush1.bf16.msra.mxu0 %v3902_v43  ;;  %1639 = vmatpush1.bf16.msra.mxu1 %v3908_v44 }
 0x326   : >> { %1599 = vmatprep.subr.bf16.mxu0 %v3914_v45  ;;  %1640 = vmatprep.subr.bf16.mxu1 %v3919_v46 }
 0x329   : >> { %1600 = vmatpush1.bf16.msra.mxu0 %v3924_v47  ;;  %1641 = vmatpush1.bf16.msra.mxu1 %v3929_v48 }
 0x32a   : >> { %1601 = vmatprep.subr.bf16.mxu0 %v3936_v49  ;;  %1642 = vmatprep.subr.bf16.mxu1 %v3943_v50 }
 0x32d   : >> { %1602 = vmatpush1.bf16.msra.mxu0 %v3948_v51  ;;  %1643 = vmatpush1.bf16.msra.mxu1 %v3955_v52  ;;  %v1059_v52 = vld [vmem:[%s1058_s23] ss:$8 sm:$0xf]  ;;  %s2419_s23 = sshra.s32 %s2418_s22, 3 }
 0x32e   : >> { %1603 = vmatprep.subr.bf16.mxu0 %v3960_v53  ;;  %1644 = vmatprep.subr.bf16.mxu1 %v3967_v54  ;;  %s3529_s26 = sshll.u32 %s2419_s23, 5 }
 0x32f   : >> { %s2425_s27 = sadd.s32 %s3529_s26, %s2422_s24 }
 0x330   : >> { %s2426_s28 = scalar_lea.vmem [#allocation2], %s2425_s27 }
 0x331   : >> { %1604 = vmatpush1.bf16.msra.mxu0 %v3972_v55  ;;  %1645 = vmatpush1.bf16.msra.mxu1 %v3977_v56 }
 0x332   : >> { %1605 = vmatprep.subr.bf16.mxu0 %v3984_v57  ;;  %1646 = vmatprep.subr.bf16.mxu1 %v3991_v58 }
 0x335   : >> { %1606 = vmatpush1.bf16.msra.mxu0 %v3996_v59  ;;  %1647 = vmatpush1.bf16.msra.mxu1 %v4003_v60 }
 0x336   : >> { %1607 = vmatprep.subr.bf16.mxu0 %v4008_v61  ;;  %1648 = vmatprep.subr.bf16.mxu1 %v4015_v62 }
 0x339   : >> { %1608 = vmatpush1.bf16.msra.mxu0 %v4020_v63  ;;  %1649 = vmatpush1.bf16.msra.mxu1 %v4025_v0 }
 0x33a   : >> { %1609 = vmatprep.subr.bf16.mxu0 %v4030_v1  ;;  %1650 = vmatprep.subr.bf16.mxu1 %v4035_v2 }
 0x33d   : >> { %1610 = vmatpush1.bf16.msra.mxu0 %v4044_v3  ;;  %1651 = vmatpush1.bf16.msra.mxu1 %v4049_v4 }
 0x33e   : >> { %1937 = vmatprep.subr.bf16.mxu0 %v4203_v34  ;;  %1978 = vmatprep.subr.bf16.mxu1 %v4208_v35 }
 0x3f3   : >> { %v1287_v39 = vpop.f32.mrb[8].mxu0  ;;  %v1328_v40 = vpop.f32.mrb[8].mxu1 }
 0x3f4   : >> { %v1289_v41 = vpop.f32.mrb[9].mxu0  ;;  %v1330_v42 = vpop.f32.mrb[9].mxu1 }
 0x3f5   : >> { %v1339_v43 = vcombine.low %v1287_v39, %v1289_v41  ;;  %v1340_v44 = vcombine.low %v1328_v40, %v1330_v42  ;;  %v1291_v45 = vpop.f32.mrb[10].mxu0  ;;  %v1332_v46 = vpop.f32.mrb[10].mxu1  ;;  %v4338_v39 = vld [vmem:[%s4544_s2 + $0xa8] ss:$16 sps:$4 sm:$0xff]   ;;  %v4345_v40 = vld [vmem:[%s4544_s2 + $0xc4] ss:$16 sps:$4 sm:$0xff]  }
 0x3f6   : >> { %v1292_v47 = vpop.f32.mrb[11].mxu0  ;;  %v1333_v48 = vpop.f32.mrb[11].mxu1  ;;  %v4350_v41 = vld [vmem:[%s4544_s2 + $0xcc] ss:$16 sps:$4 sm:$0xff]   ;;  %v4357_v42 = vld [vmem:[%s4544_s2 + $0xc0] ss:$16 sps:$4 sm:$0xff]  }
 0x3f7   : >> { %v1347_v49 = vrot.slane %v1339_v43, %v4100_v13  ;;  %v1354_v50 = vrot.slane %v1340_v44, %v4100_v13  ;;  %v4362_v43 = vld [vmem:[%s4544_s2 + $0xc8] ss:$16 sps:$4 sm:$0xff]   ;;  %v4369_v44 = vld [vmem:[%s4544_s2 + $0xe4] ss:$16 sps:$4 sm:$0xff]   ;;  %v4374_v45 = vld [vmem:[%s4544_s2 + $0xec] ss:$16 sps:$4 sm:$0xff]  }
 0x3f8   : >> { %v4381_v46 = vld [vmem:[%s4544_s2 + $0xe0] ss:$16 sps:$4 sm:$0xff]   ;;  %v4386_v47 = vld [vmem:[%s4544_s2 + $0xe8] ss:$16 sps:$4 sm:$0xff]  }
 0x3f9   : >> { %v1355_v51 = vcombine.low %v1347_v49, %v1354_v50 }
 0x3fb   : >> { %v1362_v53 = vrot.slane %v1355_v51, %v4100_v13 }
 0x3fd   : >> { %v1364_v54 = vadd.f32 %v1362_v53, %v1059_v52 }
 0x3ff   : >> { %v1365_v55 = vmul.f32 0.5, %v1364_v54  ;;  %v1370_v56 = vrot.slane %v1364_v54, 1  ;;  %v1376_v58 = vrot.slane %v1364_v54, 2  ;;  %v1379_v59 = vrot.slane %v1364_v54, 3 }
 0x401   : >> { %3690 = vtanh.f32 %v1365_v55  ;;  %v1372_v57 = vmul.f32 0.5, %v1370_v56  ;;  %v1381_v60 = vmul.f32 0.5, %v1379_v59 }
 0x403   : >> { %3692 = vtanh.f32 %v1372_v57 }
 0x404   : >> { %3694 = vtanh.f32 %v1376_v58 }
 0x405   : >> { %3696 = vtanh.f32 %v1381_v60 }
 0x40b   : >> { %v3691_v61 = vpop.eup %3690 }
 0x40c   : >> { %v1367_v62 = vmul.f32 0.5, %v3691_v61  ;;  %v1401_v61 = vld [vmem:[%s1400_s6] ss:$8 sm:$0xf]  ;;  %s2764_s6 = sand.u32 7, %s2760_s29 }
 0x40d   : >> { %v3693_v63 = vpop.eup %3692  ;;  %s2767_s8 = sadd.s32 %s3530_s7, %s2764_s6 }
 0x40e   : >> { %v1368_v0 = vadd.f32 0.5, %v1367_v62  ;;  %v1374_v1 = vmul.f32 0.5, %v3693_v63  ;;  %v3695_v3 = vpop.eup %3694  ;;  %s2768_s5 = scalar_lea.vmem [#allocation2], %s2767_s8 }
 0x40f   : >> { %v3697_v30 = vpop.eup %3696 }
 0x410   : >> { %v1375_v2 = vadd.f32 0.5, %v1374_v1  ;;  %v1385_v4 = vmul.f32 %v1368_v0, %v4153_v22  ;;  %v1383_v31 = vmul.f32 0.5, %v3697_v30  ;;  %v4297_v22 = vld [vmem:[%s4544_s2 + $0x84] ss:$16 sps:$4 sm:$0xff]  }
 0x412   : >> { %v1386_v15 = vmul.f32 %v3695_v3, %v1375_v2  ;;  %v1384_v36 = vadd.f32 0.5, %v1383_v31 }
 0x414   : >> { %v4194_v29 = vadd.f32 %v1386_v15, %v1385_v4 }
 0x416   : >> { %3698 = vtanh.f32 %v4194_v29 }
 0x420   : >> { %v3699_v37 = vpop.eup %3698 }
 0x421   : >> { %v1389_v32 = vmul.f32 %v3699_v37, %v1384_v36 }
 0x423   : >> { %3340 = vst [vmem:[%s4111_s9 + $0x2] sm:$0x1] %v1389_v32  ;;  %v1402_v33 = vpack.c.bf16 %v1389_v32, %v1389_v32 }
 0x425   : >> { %1628 = vmatmul.mubr.bf16.vlgmr.msra.gmra.mrb[12].mxu0 %v1402_v33  ;;  %1669 = vmatmul.mubr.bf16.vlgmr.msra.gmra.mrb[12].mxu1 %v1402_v33 }
 0x426   : >> { %1969 = vmatprep.mubr.bf16.mxu0 %v3784_v38  ;;  %2010 = vmatprep.mubr.bf16.mxu1 %v3784_v38 }
 0x427   : >> { %1938 = vmatpush1.bf16.msra.mxu0 %v4213_v5  ;;  %1979 = vmatpush1.bf16.msra.mxu1 %v4218_v6 }
 0x428   : >> { %1939 = vmatprep.subr.bf16.mxu0 %v4227_v7  ;;  %1980 = vmatprep.subr.bf16.mxu1 %v4232_v9 }
 0x42b   : >> { %1940 = vmatpush1.bf16.msra.mxu0 %v4237_v11  ;;  %1981 = vmatpush1.bf16.msra.mxu1 %v4242_v12 }
 0x42c   : >> { %1941 = vmatprep.subr.bf16.mxu0 %v4251_v14  ;;  %1982 = vmatprep.subr.bf16.mxu1 %v4256_v16 }
 0x42f   : >> { %1942 = vmatpush1.bf16.msra.mxu0 %v4261_v17  ;;  %1983 = vmatpush1.bf16.msra.mxu1 %v4266_v18 }
 0x430   : >> { %1943 = vmatprep.subr.bf16.mxu0 %v4275_v19  ;;  %1984 = vmatprep.subr.bf16.mxu1 %v4280_v20 }
 0x433   : >> { %1944 = vmatpush1.bf16.msra.mxu0 %v4285_v21  ;;  %1985 = vmatpush1.bf16.msra.mxu1 %v4290_v8 }
 0x434   : >> { %1945 = vmatprep.subr.bf16.mxu0 %v4297_v22  ;;  %1986 = vmatprep.subr.bf16.mxu1 %v4314_v25 }
 0x437   : >> { %1946 = vmatpush1.bf16.msra.mxu0 %v4304_v23  ;;  %1987 = vmatpush1.bf16.msra.mxu1 %v4309_v24 }
 0x438   : >> { %1947 = vmatprep.subr.bf16.mxu0 %v4320_v26  ;;  %1988 = vmatprep.subr.bf16.mxu1 %v4325_v27 }
 0x43b   : >> { %1948 = vmatpush1.bf16.msra.mxu0 %v4333_v28  ;;  %1989 = vmatpush1.bf16.msra.mxu1 %v4338_v39 }
 0x43c   : >> { %1949 = vmatprep.subr.bf16.mxu0 %v4345_v40  ;;  %1990 = vmatprep.subr.bf16.mxu1 %v4350_v41 }
 0x43f   : >> { %1950 = vmatpush1.bf16.msra.mxu0 %v4357_v42  ;;  %1991 = vmatpush1.bf16.msra.mxu1 %v4362_v43 }
 0x440   : >> { %1951 = vmatprep.subr.bf16.mxu0 %v4369_v44  ;;  %1992 = vmatprep.subr.bf16.mxu1 %v4374_v45 }
 0x443   : >> { %1952 = vmatpush1.bf16.msra.mxu0 %v4381_v46  ;;  %1993 = vmatpush1.bf16.msra.mxu1 %v4386_v47 }
 0x444   : >> { %2279 = vmatprep.subr.bf16.mxu0 %v4203_v34  ;;  %2320 = vmatprep.subr.bf16.mxu1 %v4208_v35 }
 0x4f8   : >> { %v1629_v48 = vpop.f32.mrb[12].mxu0  ;;  %v1670_v49 = vpop.f32.mrb[12].mxu1 }
 0x4f9   : >> { %v1631_v50 = vpop.f32.mrb[13].mxu0  ;;  %v1672_v51 = vpop.f32.mrb[13].mxu1 }
 0x4fa   : >> { %v1681_v52 = vcombine.low %v1629_v48, %v1631_v50  ;;  %v1682_v53 = vcombine.low %v1670_v49, %v1672_v51  ;;  %v1633_v54 = vpop.f32.mrb[14].mxu0  ;;  %v1674_v55 = vpop.f32.mrb[14].mxu1 }
 0x4fb   : >> { %v1634_v56 = vpop.f32.mrb[15].mxu0  ;;  %v1675_v57 = vpop.f32.mrb[15].mxu1 }
 0x4fc   : >> { %v1689_v58 = vrot.slane %v1681_v52, %v4100_v13  ;;  %v1696_v59 = vrot.slane %v1682_v53, %v4100_v13 }
 0x4fe   : >> { %v1697_v60 = vcombine.low %v1689_v58, %v1696_v59 }
 0x500   : >> { %v1704_v62 = vrot.slane %v1697_v60, %v4100_v13 }
 0x502   : >> { %v1706_v63 = vadd.f32 %v1704_v62, %v1401_v61 }
 0x504   : >> { %v1707_v0 = vmul.f32 0.5, %v1706_v63  ;;  %v1712_v1 = vrot.slane %v1706_v63, 1  ;;  %v1718_v3 = vrot.slane %v1706_v63, 2  ;;  %v1721_v4 = vrot.slane %v1706_v63, 3 }
 0x506   : >> { %3700 = vtanh.f32 %v1707_v0  ;;  %v1714_v2 = vmul.f32 0.5, %v1712_v1  ;;  %v1723_v15 = vmul.f32 0.5, %v1721_v4 }
 0x508   : >> { %3702 = vtanh.f32 %v1714_v2 }
 0x509   : >> { %3704 = vtanh.f32 %v1718_v3 }
 0x50a   : >> { %3706 = vtanh.f32 %v1723_v15 }
 0x510   : >> { %v3701_v30 = vpop.eup %3700 }
 0x511   : >> { %v1709_v31 = vmul.f32 0.5, %v3701_v30  ;;  %v1743_v30 = vld [vmem:[%s1742_s14] ss:$8 sm:$0xf] }
 0x512   : >> { %v3703_v36 = vpop.eup %3702 }
 0x513   : >> { %v1710_v37 = vadd.f32 0.5, %v1709_v31  ;;  %v1716_v32 = vmul.f32 0.5, %v3703_v36  ;;  %v3705_v48 = vpop.eup %3704 }
 0x514   : >> { %v3707_v52 = vpop.eup %3706 }
 0x515   : >> { %v1717_v33 = vadd.f32 0.5, %v1716_v32  ;;  %v1727_v49 = vmul.f32 %v1710_v37, %v4194_v29  ;;  %v1725_v53 = vmul.f32 0.5, %v3707_v52 }
 0x517   : >> { %v1728_v50 = vmul.f32 %v3705_v48, %v1717_v33  ;;  %v1726_v54 = vadd.f32 0.5, %v1725_v53 }
 0x519   : >> { %v4399_v51 = vadd.f32 %v1728_v50, %v1727_v49 }
 0x51b   : >> { %3708 = vtanh.f32 %v4399_v51 }
 0x525   : >> { %v3709_v55 = vpop.eup %3708 }
 0x526   : >> { %v1731_v56 = vmul.f32 %v3709_v55, %v1726_v54 }
 0x528   : >> { %3376 = vst [vmem:[%s4111_s9 + $0x3] sm:$0x1] %v1731_v56  ;;  %v1744_v57 = vpack.c.bf16 %v1731_v56, %v1731_v56 }
 0x52a   : >> { %1970 = vmatmul.mubr.bf16.vlgmr.msra.gmra.mrb[16].mxu0 %v1744_v57  ;;  %2011 = vmatmul.mubr.bf16.vlgmr.msra.gmra.mrb[16].mxu1 %v1744_v57 }
 0x52b   : >> { %2280 = vmatpush1.bf16.msra.mxu0 %v4213_v5  ;;  %2321 = vmatpush1.bf16.msra.mxu1 %v4218_v6 }
 0x52c   : >> { %2281 = vmatprep.subr.bf16.mxu0 %v4227_v7  ;;  %2322 = vmatprep.subr.bf16.mxu1 %v4232_v9 }
 0x52d   : >> { %2311 = vmatprep.mubr.bf16.mxu0 %v3784_v38  ;;  %2352 = vmatprep.mubr.bf16.mxu1 %v3784_v38 }
 0x52f   : >> { %2282 = vmatpush1.bf16.msra.mxu0 %v4237_v11  ;;  %2323 = vmatpush1.bf16.msra.mxu1 %v4242_v12 }
 0x530   : >> { %2283 = vmatprep.subr.bf16.mxu0 %v4251_v14  ;;  %2324 = vmatprep.subr.bf16.mxu1 %v4256_v16 }
 0x533   : >> { %2284 = vmatpush1.bf16.msra.mxu0 %v4261_v17  ;;  %2325 = vmatpush1.bf16.msra.mxu1 %v4266_v18 }
 0x534   : >> { %2285 = vmatprep.subr.bf16.mxu0 %v4275_v19  ;;  %2326 = vmatprep.subr.bf16.mxu1 %v4280_v20 }
 0x537   : >> { %2286 = vmatpush1.bf16.msra.mxu0 %v4285_v21  ;;  %2327 = vmatpush1.bf16.msra.mxu1 %v4290_v8 }
 0x538   : >> { %2287 = vmatprep.subr.bf16.mxu0 %v4297_v22  ;;  %2328 = vmatprep.subr.bf16.mxu1 %v4314_v25 }
 0x53b   : >> { %2288 = vmatpush1.bf16.msra.mxu0 %v4304_v23  ;;  %2329 = vmatpush1.bf16.msra.mxu1 %v4309_v24 }
 0x53c   : >> { %2289 = vmatprep.subr.bf16.mxu0 %v4320_v26  ;;  %2330 = vmatprep.subr.bf16.mxu1 %v4325_v27 }
 0x53f   : >> { %2290 = vmatpush1.bf16.msra.mxu0 %v4333_v28  ;;  %2331 = vmatpush1.bf16.msra.mxu1 %v4338_v39 }
 0x540   : >> { %2291 = vmatprep.subr.bf16.mxu0 %v4345_v40  ;;  %2332 = vmatprep.subr.bf16.mxu1 %v4350_v41 }
 0x543   : >> { %2292 = vmatpush1.bf16.msra.mxu0 %v4357_v42  ;;  %2333 = vmatpush1.bf16.msra.mxu1 %v4362_v43 }
 0x544   : >> { %2293 = vmatprep.subr.bf16.mxu0 %v4369_v44  ;;  %2334 = vmatprep.subr.bf16.mxu1 %v4374_v45 }
 0x547   : >> { %2294 = vmatpush1.bf16.msra.mxu0 %v4381_v46  ;;  %2335 = vmatpush1.bf16.msra.mxu1 %v4386_v47 }
 0x548   : >> { %2621 = vmatprep.subr.bf16.mxu0 %v4203_v34  ;;  %2662 = vmatprep.subr.bf16.mxu1 %v4208_v35 }
 0x5fd   : >> { %v1971_v29 = vpop.f32.mrb[16].mxu0  ;;  %v2012_v58 = vpop.f32.mrb[16].mxu1 }
 0x5fe   : >> { %v1973_v59 = vpop.f32.mrb[17].mxu0  ;;  %v2014_v60 = vpop.f32.mrb[17].mxu1 }
 0x5ff   : >> { %v2023_v61 = vcombine.low %v1971_v29, %v1973_v59  ;;  %v2024_v62 = vcombine.low %v2012_v58, %v2014_v60  ;;  %v1975_v63 = vpop.f32.mrb[18].mxu0  ;;  %v2016_v0 = vpop.f32.mrb[18].mxu1 }
 0x600   : >> { %v1976_v1 = vpop.f32.mrb[19].mxu0  ;;  %v2017_v2 = vpop.f32.mrb[19].mxu1 }
 0x601   : >> { %v2031_v3 = vrot.slane %v2023_v61, %v4100_v13  ;;  %v2038_v4 = vrot.slane %v2024_v62, %v4100_v13 }
 0x603   : >> { %v2039_v15 = vcombine.low %v2031_v3, %v2038_v4 }
 0x605   : >> { %v2046_v31 = vrot.slane %v2039_v15, %v4100_v13 }
 0x607   : >> { %v2048_v36 = vadd.f32 %v2046_v31, %v1743_v30 }
 0x609   : >> { %v2049_v37 = vmul.f32 0.5, %v2048_v36  ;;  %v2054_v32 = vrot.slane %v2048_v36, 1  ;;  %v2060_v48 = vrot.slane %v2048_v36, 2  ;;  %v2063_v49 = vrot.slane %v2048_v36, 3 }
 0x60b   : >> { %3710 = vtanh.f32 %v2049_v37  ;;  %v2056_v33 = vmul.f32 0.5, %v2054_v32  ;;  %v2065_v50 = vmul.f32 0.5, %v2063_v49  ;;  %v2085_v49 = vld [vmem:[%s2084_s21] ss:$8 sm:$0xf] }
 0x60d   : >> { %3712 = vtanh.f32 %v2056_v33 }
 0x60e   : >> { %3714 = vtanh.f32 %v2060_v48 }
 0x60f   : >> { %3716 = vtanh.f32 %v2065_v50 }
 0x615   : >> { %v3711_v52 = vpop.eup %3710 }
 0x616   : >> { %v2051_v53 = vmul.f32 0.5, %v3711_v52 }
 0x617   : >> { %v3713_v54 = vpop.eup %3712 }
 0x618   : >> { %v2052_v55 = vadd.f32 0.5, %v2051_v53  ;;  %v2058_v56 = vmul.f32 0.5, %v3713_v54  ;;  %v3715_v29 = vpop.eup %3714 }
 0x619   : >> { %v3717_v61 = vpop.eup %3716 }
 0x61a   : >> { %v2059_v57 = vadd.f32 0.5, %v2058_v56  ;;  %v2069_v58 = vmul.f32 %v2052_v55, %v4399_v51  ;;  %v2067_v62 = vmul.f32 0.5, %v3717_v61 }
 0x61c   : >> { %v2070_v59 = vmul.f32 %v3715_v29, %v2059_v57  ;;  %v2068_v63 = vadd.f32 0.5, %v2067_v62 }
 0x61e   : >> { %v4442_v60 = vadd.f32 %v2070_v59, %v2069_v58 }
 0x620   : >> { %3718 = vtanh.f32 %v4442_v60 }
 0x62a   : >> { %v3719_v0 = vpop.eup %3718 }
 0x62b   : >> { %v2073_v1 = vmul.f32 %v3719_v0, %v2068_v63 }
 0x62d   : >> { %3412 = vst [vmem:[%s4111_s9 + $0x4] sm:$0x1] %v2073_v1  ;;  %v2086_v2 = vpack.c.bf16 %v2073_v1, %v2073_v1 }
 0x62f   : >> { %2312 = vmatmul.mubr.bf16.vlgmr.msra.gmra.mrb[20].mxu0 %v2086_v2  ;;  %2353 = vmatmul.mubr.bf16.vlgmr.msra.gmra.mrb[20].mxu1 %v2086_v2 }
 0x630   : >> { %2622 = vmatpush1.bf16.msra.mxu0 %v4213_v5  ;;  %2663 = vmatpush1.bf16.msra.mxu1 %v4218_v6 }
 0x631   : >> { %2623 = vmatprep.subr.bf16.mxu0 %v4227_v7  ;;  %2664 = vmatprep.subr.bf16.mxu1 %v4232_v9 }
 0x632   : >> { %2653 = vmatprep.mubr.bf16.mxu0 %v3784_v38  ;;  %2694 = vmatprep.mubr.bf16.mxu1 %v3784_v38 }
 0x634   : >> { %2624 = vmatpush1.bf16.msra.mxu0 %v4237_v11  ;;  %2665 = vmatpush1.bf16.msra.mxu1 %v4242_v12 }
 0x635   : >> { %2625 = vmatprep.subr.bf16.mxu0 %v4251_v14  ;;  %2666 = vmatprep.subr.bf16.mxu1 %v4256_v16 }
 0x638   : >> { %2626 = vmatpush1.bf16.msra.mxu0 %v4261_v17  ;;  %2667 = vmatpush1.bf16.msra.mxu1 %v4266_v18 }
 0x639   : >> { %2627 = vmatprep.subr.bf16.mxu0 %v4275_v19  ;;  %2668 = vmatprep.subr.bf16.mxu1 %v4280_v20 }
 0x63c   : >> { %2628 = vmatpush1.bf16.msra.mxu0 %v4285_v21  ;;  %2669 = vmatpush1.bf16.msra.mxu1 %v4290_v8 }
 0x63d   : >> { %2629 = vmatprep.subr.bf16.mxu0 %v4297_v22  ;;  %2670 = vmatprep.subr.bf16.mxu1 %v4314_v25 }
 0x640   : >> { %2630 = vmatpush1.bf16.msra.mxu0 %v4304_v23  ;;  %2671 = vmatpush1.bf16.msra.mxu1 %v4309_v24 }
 0x641   : >> { %2631 = vmatprep.subr.bf16.mxu0 %v4320_v26  ;;  %2672 = vmatprep.subr.bf16.mxu1 %v4325_v27 }
 0x644   : >> { %2632 = vmatpush1.bf16.msra.mxu0 %v4333_v28  ;;  %2673 = vmatpush1.bf16.msra.mxu1 %v4338_v39 }
 0x645   : >> { %2633 = vmatprep.subr.bf16.mxu0 %v4345_v40  ;;  %2674 = vmatprep.subr.bf16.mxu1 %v4350_v41 }
 0x648   : >> { %2634 = vmatpush1.bf16.msra.mxu0 %v4357_v42  ;;  %2675 = vmatpush1.bf16.msra.mxu1 %v4362_v43 }
 0x649   : >> { %2635 = vmatprep.subr.bf16.mxu0 %v4369_v44  ;;  %2676 = vmatprep.subr.bf16.mxu1 %v4374_v45 }
 0x64c   : >> { %2636 = vmatpush1.bf16.msra.mxu0 %v4381_v46  ;;  %2677 = vmatpush1.bf16.msra.mxu1 %v4386_v47 }
 0x64d   : >> { %2963 = vmatprep.subr.bf16.mxu0 %v4203_v34  ;;  %3004 = vmatprep.subr.bf16.mxu1 %v4208_v35 }
 0x702   : >> { %v2313_v51 = vpop.f32.mrb[20].mxu0  ;;  %v2354_v3 = vpop.f32.mrb[20].mxu1 }
 0x703   : >> { %v2315_v4 = vpop.f32.mrb[21].mxu0  ;;  %v2356_v15 = vpop.f32.mrb[21].mxu1 }
 0x704   : >> { %v2365_v30 = vcombine.low %v2313_v51, %v2315_v4  ;;  %v2366_v31 = vcombine.low %v2354_v3, %v2356_v15  ;;  %v2317_v36 = vpop.f32.mrb[22].mxu0  ;;  %v2358_v37 = vpop.f32.mrb[22].mxu1 }
 0x705   : >> { %v2318_v32 = vpop.f32.mrb[23].mxu0  ;;  %v2359_v33 = vpop.f32.mrb[23].mxu1 }
 0x706   : >> { %v2373_v48 = vrot.slane %v2365_v30, %v4100_v13  ;;  %v2380_v34 = vrot.slane %v2366_v31, %v4100_v13 }
 0x708   : >> { %v2381_v35 = vcombine.low %v2373_v48, %v2380_v34 }
 0x70a   : >> { %v2388_v50 = vrot.slane %v2381_v35, %v4100_v13 }
 0x70c   : >> { %v2390_v52 = vadd.f32 %v2388_v50, %v2085_v49 }
 0x70e   : >> { %v2391_v53 = vmul.f32 0.5, %v2390_v52  ;;  %v2396_v54 = vrot.slane %v2390_v52, 1  ;;  %v2402_v56 = vrot.slane %v2390_v52, 2  ;;  %v2405_v57 = vrot.slane %v2390_v52, 3 }
 0x710   : >> { %3720 = vtanh.f32 %v2391_v53  ;;  %v2398_v55 = vmul.f32 0.5, %v2396_v54  ;;  %v2407_v29 = vmul.f32 0.5, %v2405_v57 }
 0x712   : >> { %3722 = vtanh.f32 %v2398_v55 }
 0x713   : >> { %3724 = vtanh.f32 %v2402_v56 }
 0x714   : >> { %3726 = vtanh.f32 %v2407_v29 }
 0x71a   : >> { %v3721_v58 = vpop.eup %3720 }
 0x71b   : >> { %v2393_v59 = vmul.f32 0.5, %v3721_v58 }
 0x71c   : >> { %v3723_v61 = vpop.eup %3722 }
 0x71d   : >> { %v2394_v62 = vadd.f32 0.5, %v2393_v59  ;;  %v2400_v63 = vmul.f32 0.5, %v3723_v61  ;;  %v3725_v1 = vpop.eup %3724 }
 0x71e   : >> { %v3727_v4 = vpop.eup %3726 }
 0x71f   : >> { %v2401_v0 = vadd.f32 0.5, %v2400_v63  ;;  %v2411_v2 = vmul.f32 %v2394_v62, %v4442_v60  ;;  %v2409_v15 = vmul.f32 0.5, %v3727_v4 }
 0x721   : >> { %v2412_v51 = vmul.f32 %v3725_v1, %v2401_v0  ;;  %v2410_v30 = vadd.f32 0.5, %v2409_v15  ;;  %v2769_v0 = vld [vmem:[%s2768_s5] ss:$8 sm:$0xf] }
 0x723   : >> { %v4485_v3 = vadd.f32 %v2412_v51, %v2411_v2 }
 0x725   : >> { %3728 = vtanh.f32 %v4485_v3 }
 0x72f   : >> { %v3729_v31 = vpop.eup %3728 }
 0x730   : >> { %v2415_v36 = vmul.f32 %v3729_v31, %v2410_v30 }
 0x732   : >> { %3448 = vst [vmem:[%s4111_s9 + $0x5] sm:$0x1] %v2415_v36  ;;  %v2428_v37 = vpack.c.bf16 %v2415_v36, %v2415_v36 }
 0x734   : >> { %2654 = vmatmul.mubr.bf16.vlgmr.msra.gmra.mrb[24].mxu0 %v2428_v37  ;;  %2695 = vmatmul.mubr.bf16.vlgmr.msra.gmra.mrb[24].mxu1 %v2428_v37 }
 0x735   : >> { %2964 = vmatpush1.bf16.msra.mxu0 %v4213_v5  ;;  %3005 = vmatpush1.bf16.msra.mxu1 %v4218_v6 }
 0x736   : >> { %2965 = vmatprep.subr.bf16.mxu0 %v4227_v7  ;;  %3006 = vmatprep.subr.bf16.mxu1 %v4232_v9 }
 0x737   : >> { %2995 = vmatprep.mubr.bf16.mxu0 %v3784_v38  ;;  %3036 = vmatprep.mubr.bf16.mxu1 %v3784_v38 }
 0x739   : >> { %2966 = vmatpush1.bf16.msra.mxu0 %v4237_v11  ;;  %3007 = vmatpush1.bf16.msra.mxu1 %v4242_v12 }
 0x73a   : >> { %2967 = vmatprep.subr.bf16.mxu0 %v4251_v14  ;;  %3008 = vmatprep.subr.bf16.mxu1 %v4256_v16 }
 0x73d   : >> { %2968 = vmatpush1.bf16.msra.mxu0 %v4261_v17  ;;  %3009 = vmatpush1.bf16.msra.mxu1 %v4266_v18 }
 0x73e   : >> { %2969 = vmatprep.subr.bf16.mxu0 %v4275_v19  ;;  %3010 = vmatprep.subr.bf16.mxu1 %v4280_v20 }
 0x741   : >> { %2970 = vmatpush1.bf16.msra.mxu0 %v4285_v21  ;;  %3011 = vmatpush1.bf16.msra.mxu1 %v4290_v8  ;;  %v2427_v21 = vld [vmem:[%s2426_s28] ss:$8 sm:$0xf] }
 0x742   : >> { %2971 = vmatprep.subr.bf16.mxu0 %v4297_v22  ;;  %3012 = vmatprep.subr.bf16.mxu1 %v4314_v25 }
 0x745   : >> { %2972 = vmatpush1.bf16.msra.mxu0 %v4304_v23  ;;  %3013 = vmatpush1.bf16.msra.mxu1 %v4309_v24 }
 0x746   : >> { %2973 = vmatprep.subr.bf16.mxu0 %v4320_v26  ;;  %3014 = vmatprep.subr.bf16.mxu1 %v4325_v27 }
 0x749   : >> { %2974 = vmatpush1.bf16.msra.mxu0 %v4333_v28  ;;  %3015 = vmatpush1.bf16.msra.mxu1 %v4338_v39 }
 0x74a   : >> { %2975 = vmatprep.subr.bf16.mxu0 %v4345_v40  ;;  %3016 = vmatprep.subr.bf16.mxu1 %v4350_v41 }
 0x74d   : >> { %2976 = vmatpush1.bf16.msra.mxu0 %v4357_v42  ;;  %3017 = vmatpush1.bf16.msra.mxu1 %v4362_v43 }
 0x74e   : >> { %2977 = vmatprep.subr.bf16.mxu0 %v4369_v44  ;;  %3018 = vmatprep.subr.bf16.mxu1 %v4374_v45 }
 0x751   : >> { %2978 = vmatpush1.bf16.msra.mxu0 %v4381_v46  ;;  %3019 = vmatpush1.bf16.msra.mxu1 %v4386_v47 }
 0x807   : >> { %v2655_v38 = vpop.f32.mrb[24].mxu0  ;;  %v2696_v5 = vpop.f32.mrb[24].mxu1 }
 0x808   : >> { %v2657_v6 = vpop.f32.mrb[25].mxu0  ;;  %v2698_v7 = vpop.f32.mrb[25].mxu1 }
 0x809   : >> { %v2707_v9 = vcombine.low %v2655_v38, %v2657_v6  ;;  %v2708_v11 = vcombine.low %v2696_v5, %v2698_v7  ;;  %v2659_v12 = vpop.f32.mrb[26].mxu0  ;;  %v2700_v14 = vpop.f32.mrb[26].mxu1 }
 0x80a   : >> { %v2660_v16 = vpop.f32.mrb[27].mxu0  ;;  %v2701_v17 = vpop.f32.mrb[27].mxu1 }
 0x80b   : >> { %v2715_v18 = vrot.slane %v2707_v9, %v4100_v13  ;;  %v2722_v19 = vrot.slane %v2708_v11, %v4100_v13 }
 0x80d   : >> { %v2723_v20 = vcombine.low %v2715_v18, %v2722_v19 }
 0x80f   : >> { %v2730_v8 = vrot.slane %v2723_v20, %v4100_v13 }
 0x811   : >> { %v2732_v22 = vadd.f32 %v2730_v8, %v2427_v21 }
 0x813   : >> { %v2733_v23 = vmul.f32 0.5, %v2732_v22  ;;  %v2738_v24 = vrot.slane %v2732_v22, 1  ;;  %v2744_v26 = vrot.slane %v2732_v22, 2  ;;  %v2747_v27 = vrot.slane %v2732_v22, 3 }
 0x815   : >> { %3730 = vtanh.f32 %v2733_v23  ;;  %v2740_v25 = vmul.f32 0.5, %v2738_v24  ;;  %v2749_v28 = vmul.f32 0.5, %v2747_v27 }
 0x817   : >> { %3732 = vtanh.f32 %v2740_v25 }
 0x818   : >> { %3734 = vtanh.f32 %v2744_v26 }
 0x819   : >> { %3736 = vtanh.f32 %v2749_v28 }
 0x81f   : >> { %v3731_v39 = vpop.eup %3730 }
 0x820   : >> { %v2735_v40 = vmul.f32 0.5, %v3731_v39 }
 0x821   : >> { %v3733_v41 = vpop.eup %3732 }
 0x822   : >> { %v2736_v42 = vadd.f32 0.5, %v2735_v40  ;;  %v2742_v43 = vmul.f32 0.5, %v3733_v41  ;;  %v3735_v45 = vpop.eup %3734 }
 0x823   : >> { %v3737_v32 = vpop.eup %3736 }
 0x824   : >> { %v2743_v44 = vadd.f32 0.5, %v2742_v43  ;;  %v2753_v46 = vmul.f32 %v2736_v42, %v4485_v3  ;;  %v2751_v33 = vmul.f32 0.5, %v3737_v32 }
 0x826   : >> { %v2754_v47 = vmul.f32 %v3735_v45, %v2743_v44  ;;  %v2752_v48 = vadd.f32 0.5, %v2751_v33 }
 0x828   : >> { %v2755_v60 = vadd.f32 %v2754_v47, %v2753_v46 }
 0x82a   : >> { %3738 = vtanh.f32 %v2755_v60 }
 0x834   : >> { %v3739_v34 = vpop.eup %3738 }
 0x835   : >> { %v2757_v35 = vmul.f32 %v3739_v34, %v2752_v48 }
 0x837   : >> { %3484 = vst [vmem:[%s4111_s9 + $0x6] sm:$0x1] %v2757_v35  ;;  %v2770_v49 = vpack.c.bf16 %v2757_v35, %v2757_v35 }
 0x839   : >> { %2996 = vmatmul.mubr.bf16.vlgmr.msra.gmra.mrb[28].mxu0 %v2770_v49  ;;  %3037 = vmatmul.mubr.bf16.vlgmr.msra.gmra.mrb[28].mxu1 %v2770_v49 }
 0x90c   : >> { %v2997_v50 = vpop.f32.mrb[28].mxu0  ;;  %v3038_v52 = vpop.f32.mrb[28].mxu1 }
 0x90d   : >> { %v2999_v53 = vpop.f32.mrb[29].mxu0  ;;  %v3040_v54 = vpop.f32.mrb[29].mxu1 }
 0x90e   : >> { %v3049_v55 = vcombine.low %v2997_v50, %v2999_v53  ;;  %v3050_v56 = vcombine.low %v3038_v52, %v3040_v54  ;;  %v3001_v57 = vpop.f32.mrb[30].mxu0  ;;  %v3042_v29 = vpop.f32.mrb[30].mxu1 }
 0x90f   : >> { %v3002_v58 = vpop.f32.mrb[31].mxu0  ;;  %v3043_v59 = vpop.f32.mrb[31].mxu1 }
 0x910   : >> { %v3057_v61 = vrot.slane %v3049_v55, %v4100_v13  ;;  %v3064_v62 = vrot.slane %v3050_v56, %v4100_v13 }
 0x912   : >> { %v3065_v63 = vcombine.low %v3057_v61, %v3064_v62 }
 0x914   : >> { %v3072_v1 = vrot.slane %v3065_v63, %v4100_v13 }
 0x916   : >> { %v3074_v2 = vadd.f32 %v3072_v1, %v2769_v0 }
 0x918   : >> { %v3075_v51 = vmul.f32 0.5, %v3074_v2  ;;  %v3080_v3 = vrot.slane %v3074_v2, 1  ;;  %v3086_v15 = vrot.slane %v3074_v2, 2  ;;  %v3089_v30 = vrot.slane %v3074_v2, 3 }
 0x91a   : >> { %3740 = vtanh.f32 %v3075_v51  ;;  %v3082_v4 = vmul.f32 0.5, %v3080_v3  ;;  %v3091_v31 = vmul.f32 0.5, %v3089_v30 }
 0x91c   : >> { %3742 = vtanh.f32 %v3082_v4 }
 0x91d   : >> { %3744 = vtanh.f32 %v3086_v15 }
 0x91e   : >> { %3746 = vtanh.f32 %v3091_v31 }
 0x924   : >> { %v3741_v36 = vpop.eup %3740 }
 0x925   : >> { %v3077_v37 = vmul.f32 0.5, %v3741_v36 }
 0x926   : >> { %v3743_v38 = vpop.eup %3742 }
 0x927   : >> { %v3078_v5 = vadd.f32 0.5, %v3077_v37  ;;  %v3084_v6 = vmul.f32 0.5, %v3743_v38  ;;  %v3745_v9 = vpop.eup %3744 }
 0x928   : >> { %v3747_v14 = vpop.eup %3746 }
 0x929   : >> { %v3085_v7 = vadd.f32 0.5, %v3084_v6  ;;  %v3095_v13 = vmul.f32 %v3078_v5, %v2755_v60  ;;  %v3093_v16 = vmul.f32 0.5, %v3747_v14 }
 0x92b   : >> { %v3096_v11 = vmul.f32 %v3745_v9, %v3085_v7  ;;  %v3094_v17 = vadd.f32 0.5, %v3093_v16 }
 0x92d   : >> { %v3097_v12 = vadd.f32 %v3096_v11, %v3095_v13  }
 0x92f   : >> { %3748 = vtanh.f32 %v3097_v12  ;;  %v4547_v8 = vmov %v3097_v12  ;;  %3103 = vst [vmem:[#allocation4] sm:$0x1] (%p363_p5), %v3097_v12 }
 0x936   : > { %365 = sbr.rel (!%p363_p5) target bundleno = 244 (0xf4), region = 93 }
 0x939   : >> { %v3749_v18 = vpop.eup %3748 }
 0x93a   : >> { %v3099_v19 = vmul.f32 %v3749_v18, %v3094_v17  }
 0x93c   : >> { %3520 = vst [vmem:[%s4111_s9 + $0x7] sm:$0x1] %v3099_v19  ;;  %v4548_v7 = vmov %v3099_v19  ;;  %3102 = vst [vmem:[#allocation3] sm:$0x1] (%p363_p5), %v3099_v19 }
 0x93d PF: > { %s14_s15 = sadd.s32 1, %s3768_s15  }
 0x93e   : > { %p11_p6 = scmp.ge.s32.totalorder %s14_s15, 5  }
 0x940   :  { %13 = sbr.rel (!%p11_p6) target bundleno = 1 (0x1), region = 104 }

</bundles_post_ra>
